<compile_context>
chip_gen: v7x
topology: tpu7x:2x2x1
jax: 0.10.0
libtpu: 0.0.40
codegen_flags: <defaults>
</compile_context>

<pallas_src>
import functools

import jax
import jax.numpy as jnp
from jax.experimental import pallas as pl
from jax.experimental.pallas import tpu as pltpu


def _fused_backbone_kernel(x_ref, w1_ref, b1_ref, w2_ref, b2_ref, o_ref,
                           xrp_ref, y1rp_ref, *, H, W, Cmid):
    """Two fused 3x3 / stride-1 / pad-1 conv+ReLU layers for one image, entirely in VMEM.

    x_ref   : (1, H, W*Cin)        f32  input, channels folded into lanes
    w*_ref  : (3, W*Cin_l, W*Cmid) bf16 banded weights (one matrix per kernel row kh;
                                        kw taps + column padding folded into the band)
    b*_ref  : (1, W*Cmid)          f32  bias tiled per output column (j*Cout + co)
    o_ref   : (1, H, W*Cmid)       f32  lane-dense output (last dim = 512)
    xrp_ref : (H+2, W*Cin)         f32  row-padded input scratch (halo rows zero)
    y1rp_ref: (H+2, W*Cmid)        f32  row-padded conv1 output scratch
    """
    WC = W * Cmid

    # Fold the spatial zero-padding into VMEM (no padded array materialized in HBM).
    xrp_ref[...] = jnp.zeros_like(xrp_ref)
    y1rp_ref[...] = jnp.zeros_like(y1rp_ref)
    xrp_ref[1:H + 1, :] = x_ref[0]

    # ---- conv1 + ReLU : 3 matmuls, K = W*Cin, N = W*Cmid ----
    acc = jnp.broadcast_to(b1_ref[...], (H, WC))          # bias-initialized accumulator
    for kh in range(3):
        a = xrp_ref[kh:kh + H, :].astype(jnp.bfloat16)
        acc = acc + jnp.dot(a, w1_ref[kh], preferred_element_type=jnp.float32)
    y1rp_ref[1:H + 1, :] = jnp.maximum(acc, 0.0)           # intermediate stays in VMEM

    # ---- conv2 + ReLU : 3 matmuls, K = N = W*Cmid = 512 ----
    acc = jnp.broadcast_to(b2_ref[...], (H, WC))
    for kh in range(3):
        a = y1rp_ref[kh:kh + H, :].astype(jnp.bfloat16)
        acc = acc + jnp.dot(a, w2_ref[kh], preferred_element_type=jnp.float32)
    o_ref[0] = jnp.maximum(acc, 0.0).astype(o_ref.dtype)


def _banded_conv_weights(w, W):
    """(3, 3, Cin, Cout) HWIO conv weights -> (3, W*Cin, W*Cout) banded matmul weights.

    banded[kh, jx*Cin + c, j*Cout + co] = w[kh, jx - j + 1, c, co] if |jx - j| <= 1 else 0,
    so that row-slab (H, W*Cin) @ banded[kh] accumulates exactly kernel-row kh's contribution
    of the stride-1 / pad-1 3x3 convolution (column padding handled by the band edges).
    """
    _, _, Cin, Cout = w.shape
    rel = jnp.arange(W)[:, None] - jnp.arange(W)[None, :] + 1     # (jx, j) -> kw index
    valid = (rel >= 0) & (rel <= 2)
    gathered = w[:, jnp.clip(rel, 0, 2)]                          # (3, W, W, Cin, Cout)
    banded = jnp.where(valid[None, :, :, None, None], gathered, 0.0)
    return banded.transpose(0, 1, 3, 2, 4).reshape(3, W * Cin, W * Cout)


def fused_backbone(x_nchw, params_backbone):
    (w1, b1), (w2, b2) = params_backbone
    N, Cin, H, W = x_nchw.shape
    Cmid = w1.shape[-1]

    # NCHW -> (N, H, W*Cin): channels folded onto the lane axis (lane-dense loads).
    x_flat = jnp.transpose(x_nchw, (0, 2, 3, 1)).reshape(N, H, W * Cin).astype(jnp.float32)
    w1b = _banded_conv_weights(w1, W).astype(jnp.bfloat16)
    w2b = _banded_conv_weights(w2, W).astype(jnp.bfloat16)
    b1f = jnp.tile(b1, W).reshape(1, W * Cmid).astype(jnp.float32)
    b2f = jnp.tile(b2, W).reshape(1, W * Cmid).astype(jnp.float32)

    kernel = functools.partial(_fused_backbone_kernel, H=H, W=W, Cmid=Cmid)

    out_flat = pl.pallas_call(
        kernel,
        out_shape=jax.ShapeDtypeStruct((N, H, W * Cmid), jnp.float32),
        grid_spec=pltpu.PrefetchScalarGridSpec(
            num_scalar_prefetch=0,
            grid=(N,),
            in_specs=[
                pl.BlockSpec((1, H, W * Cin), lambda n: (n, 0, 0)),
                pl.BlockSpec((3, W * Cin, W * Cmid), lambda n: (0, 0, 0)),
                pl.BlockSpec((1, W * Cmid), lambda n: (0, 0)),
                pl.BlockSpec((3, W * Cmid, W * Cmid), lambda n: (0, 0, 0)),
                pl.BlockSpec((1, W * Cmid), lambda n: (0, 0)),
            ],
            out_specs=pl.BlockSpec((1, H, W * Cmid), lambda n: (n, 0, 0)),
            scratch_shapes=[
                pltpu.VMEM((H + 2, W * Cin), jnp.float32),
                pltpu.VMEM((H + 2, W * Cmid), jnp.float32),
            ],
        ),
        compiler_params=pltpu.CompilerParams(dimension_semantics=("parallel",)),
    )(x_flat, w1b, b1f, w2b, b2f)

    # (N, H, W*Cmid) -> NHWC -> NCHW
    return jnp.transpose(out_flat.reshape(N, H, W, Cmid), (0, 3, 1, 2))


def init_params(key, cin=4, cmid=32):
    """Deterministic parameter init (shapes implied by the synthetic SSD instance)."""
    ks = jax.random.split(key, 8)

    def conv_params(k, ci, co):
        kw, kb = jax.random.split(k)
        scale = 1.0 / jnp.sqrt(ci * 9.0)
        w = jax.random.uniform(kw, (3, 3, ci, co), jnp.float32, -scale, scale)
        b = jax.random.uniform(kb, (co,), jnp.float32, -scale, scale)
        return w, b

    return {
        "backbone": [conv_params(ks[0], cin, cmid), conv_params(ks[1], cmid, cmid)],
        # kept for interface parity; unused by forward() (outputs are discarded there)
        "classifiers": [conv_params(ks[2], cmid, cmid), conv_params(ks[3], cmid, cmid)],
    }


def ssd_segmentation_forward(x_nchw, params):
    """SSDSegmentation.forward: returns backbone(x) (NCHW).

    The classifier convs' results are appended to a local list and discarded by the
    reference forward(), so they are not executed here (pure dead work; no semantic change).
    """
    return fused_backbone(x_nchw, params["backbone"])


def _conv3x3_relu_ref(x_nhwc, w, b):
    y = jax.lax.conv_general_dilated(
        x_nhwc, w, window_strides=(1, 1), padding=((1, 1), (1, 1)),
        dimension_numbers=("NHWC", "HWIO", "NHWC"))
    return jnp.maximum(y + b, 0.0)


if __name__ == "__main__":
    key = jax.random.PRNGKey(0)
    kx, kp = jax.random.split(key)

    x = jax.random.normal(kx, (2, 4, 16, 16), jnp.float32)   # NCHW, as in the PyTorch module
    params = init_params(kp, cin=4, cmid=32)

    y = jax.jit(ssd_segmentation_forward)(x, params)
    jax.block_until_ready(y)
    assert y.shape == (2, 32, 16, 16), y.shape

    # Numerical check against an XLA conv reference (loose tol: matmul operands are bf16).
    x_nhwc = jnp.transpose(x, (0, 2, 3, 1))
    (w1, b1), (w2, b2) = params["backbone"]
    ref = _conv3x3_relu_ref(_conv3x3_relu_ref(x_nhwc, w1, b1), w2, b2)
    ref = jnp.transpose(ref, (0, 3, 1, 2))
    err = float(jnp.max(jnp.abs(y - ref)))
    scale = float(jnp.max(jnp.abs(ref)))
    assert err <= 0.05 * scale + 0.02, (err, scale)

    print("KERNEL_OK")
</pallas_src>

<mosaic_0001>
module attributes {stable_mosaic.version = 11 : i64} {
  func.func @_fused_backbone_kernel(%arg0: i32, %arg1: memref<1x16x64xf32, #tpu.memory_space<vmem>>, %arg2: memref<3x64x512xbf16, #tpu.memory_space<vmem>>, %arg3: memref<1x512xf32, #tpu.memory_space<vmem>>, %arg4: memref<3x512x512xbf16, #tpu.memory_space<vmem>>, %arg5: memref<1x512xf32, #tpu.memory_space<vmem>>, %arg6: memref<1x16x512xf32, #tpu.memory_space<vmem>>, %arg7: memref<18x64xf32, #tpu.memory_space<vmem>>, %arg8: memref<18x512xf32, #tpu.memory_space<vmem>>) attributes {dimension_semantics = [#tpu.dimension_semantics<parallel>], iteration_bounds = array<i64: 2>, scalar_prefetch = 0 : i64, scratch_operands = 2 : i64, tpu.core_type = #tpu.core_type<tc>, window_params = [{transform_indices = @transform_0, window_bounds = array<i64: 1, 16, 64>}, {pipeline_mode = #tpu.pipeline_mode<synchronous>, transform_indices = @transform_1, window_bounds = array<i64: 3, 64, 512>}, {pipeline_mode = #tpu.pipeline_mode<synchronous>, transform_indices = @transform_2, window_bounds = array<i64: 1, 512>}, {pipeline_mode = #tpu.pipeline_mode<synchronous>, transform_indices = @transform_3, window_bounds = array<i64: 3, 512, 512>}, {pipeline_mode = #tpu.pipeline_mode<synchronous>, transform_indices = @transform_4, window_bounds = array<i64: 1, 512>}, {transform_indices = @transform_5, window_bounds = array<i64: 1, 16, 512>}]} {
    %cst = arith.constant 0.000000e+00 : f32
    %0 = vector.broadcast %cst : f32 to vector<18x64xf32>
    %c0 = arith.constant 0 : index
    %c0_0 = arith.constant 0 : index
    %1 = vector.load %arg7[%c0, %c0_0] : memref<18x64xf32, #tpu.memory_space<vmem>>, vector<18x64xf32>
    tpu.vector_store %arg7[%c0, %c0_0], %0 {strides = array<i32>} : memref<18x64xf32, #tpu.memory_space<vmem>>, vector<18x64xf32>,
    %cst_1 = arith.constant 0.000000e+00 : f32
    %2 = vector.broadcast %cst_1 : f32 to vector<18x512xf32>
    %c0_2 = arith.constant 0 : index
    %c0_3 = arith.constant 0 : index
    %3 = vector.load %arg8[%c0_2, %c0_3] : memref<18x512xf32, #tpu.memory_space<vmem>>, vector<18x512xf32>
    tpu.vector_store %arg8[%c0_2, %c0_3], %2 {strides = array<i32>} : memref<18x512xf32, #tpu.memory_space<vmem>>, vector<18x512xf32>,
    %c0_4 = arith.constant 0 : index
    %c0_5 = arith.constant 0 : index
    %c0_6 = arith.constant 0 : index
    %4 = vector.load %arg1[%c0_4, %c0_5, %c0_6] : memref<1x16x64xf32, #tpu.memory_space<vmem>>, vector<1x16x64xf32>
    %5 = vector.shape_cast %4 : vector<1x16x64xf32> to vector<16x64xf32>
    %c1 = arith.constant 1 : index
    %c0_7 = arith.constant 0 : index
    %6 = vector.load %arg7[%c1, %c0_7] : memref<18x64xf32, #tpu.memory_space<vmem>>, vector<16x64xf32>
    tpu.vector_store %arg7[%c1, %c0_7], %5 {strides = array<i32>} : memref<18x64xf32, #tpu.memory_space<vmem>>, vector<16x64xf32>,
    %c0_8 = arith.constant 0 : index
    %c0_9 = arith.constant 0 : index
    %7 = vector.load %arg3[%c0_8, %c0_9] : memref<1x512xf32, #tpu.memory_space<vmem>>, vector<1x512xf32>
    %8 = vector.shape_cast %7 : vector<1x512xf32> to vector<1x512xf32>
    %9 = vector.broadcast %8 : vector<1x512xf32> to vector<16x512xf32>
    %c0_10 = arith.constant 0 : index
    %c0_11 = arith.constant 0 : index
    %10 = vector.load %arg7[%c0_10, %c0_11] : memref<18x64xf32, #tpu.memory_space<vmem>>, vector<16x64xf32>
    %11 = arith.truncf %10 : vector<16x64xf32> to vector<16x64xbf16>
    %c0_12 = arith.constant 0 : index
    %c0_13 = arith.constant 0 : index
    %c0_14 = arith.constant 0 : index
    %12 = vector.load %arg2[%c0_12, %c0_13, %c0_14] : memref<3x64x512xbf16, #tpu.memory_space<vmem>>, vector<1x64x512xbf16>
    %13 = vector.shape_cast %12 : vector<1x64x512xbf16> to vector<64x512xbf16>
    %cst_15 = arith.constant dense<0.000000e+00> : vector<16x512xf32>
    %14 = tpu.matmul %11, %13, %cst_15 {dimension_numbers = #tpu.dot_dimension_numbers<[1], [0], [0], [1], [0, 0, 1, 1], [], []>} : vector<16x64xbf16>, vector<64x512xbf16>, vector<16x512xf32> -> vector<16x512xf32>
    %15 = arith.addf %9, %14 : vector<16x512xf32>
    %c1_16 = arith.constant 1 : index
    %c0_17 = arith.constant 0 : index
    %16 = vector.load %arg7[%c1_16, %c0_17] : memref<18x64xf32, #tpu.memory_space<vmem>>, vector<16x64xf32>
    %17 = arith.truncf %16 : vector<16x64xf32> to vector<16x64xbf16>
    %c1_18 = arith.constant 1 : index
    %c0_19 = arith.constant 0 : index
    %c0_20 = arith.constant 0 : index
    %18 = vector.load %arg2[%c1_18, %c0_19, %c0_20] : memref<3x64x512xbf16, #tpu.memory_space<vmem>>, vector<1x64x512xbf16>
    %19 = vector.shape_cast %18 : vector<1x64x512xbf16> to vector<64x512xbf16>
    %cst_21 = arith.constant dense<0.000000e+00> : vector<16x512xf32>
    %20 = tpu.matmul %17, %19, %cst_21 {dimension_numbers = #tpu.dot_dimension_numbers<[1], [0], [0], [1], [0, 0, 1, 1], [], []>} : vector<16x64xbf16>, vector<64x512xbf16>, vector<16x512xf32> -> vector<16x512xf32>
    %21 = arith.addf %15, %20 : vector<16x512xf32>
    %c2 = arith.constant 2 : index
    %c0_22 = arith.constant 0 : index
    %22 = vector.load %arg7[%c2, %c0_22] : memref<18x64xf32, #tpu.memory_space<vmem>>, vector<16x64xf32>
    %23 = arith.truncf %22 : vector<16x64xf32> to vector<16x64xbf16>
    %c2_23 = arith.constant 2 : index
    %c0_24 = arith.constant 0 : index
    %c0_25 = arith.constant 0 : index
    %24 = vector.load %arg2[%c2_23, %c0_24, %c0_25] : memref<3x64x512xbf16, #tpu.memory_space<vmem>>, vector<1x64x512xbf16>
    %25 = vector.shape_cast %24 : vector<1x64x512xbf16> to vector<64x512xbf16>
    %cst_26 = arith.constant dense<0.000000e+00> : vector<16x512xf32>
    %26 = tpu.matmul %23, %25, %cst_26 {dimension_numbers = #tpu.dot_dimension_numbers<[1], [0], [0], [1], [0, 0, 1, 1], [], []>} : vector<16x64xbf16>, vector<64x512xbf16>, vector<16x512xf32> -> vector<16x512xf32>
    %27 = arith.addf %21, %26 : vector<16x512xf32>
    %cst_27 = arith.constant 0.000000e+00 : f32
    %28 = vector.broadcast %cst_27 : f32 to vector<16x512xf32>
    %29 = arith.maximumf %27, %28 : vector<16x512xf32>
    %c1_28 = arith.constant 1 : index
    %c0_29 = arith.constant 0 : index
    %30 = vector.load %arg8[%c1_28, %c0_29] : memref<18x512xf32, #tpu.memory_space<vmem>>, vector<16x512xf32>
    tpu.vector_store %arg8[%c1_28, %c0_29], %29 {strides = array<i32>} : memref<18x512xf32, #tpu.memory_space<vmem>>, vector<16x512xf32>,
    %c0_30 = arith.constant 0 : index
    %c0_31 = arith.constant 0 : index
    %31 = vector.load %arg5[%c0_30, %c0_31] : memref<1x512xf32, #tpu.memory_space<vmem>>, vector<1x512xf32>
    %32 = vector.shape_cast %31 : vector<1x512xf32> to vector<1x512xf32>
    %33 = vector.broadcast %32 : vector<1x512xf32> to vector<16x512xf32>
    %c0_32 = arith.constant 0 : index
    %c0_33 = arith.constant 0 : index
    %34 = vector.load %arg8[%c0_32, %c0_33] : memref<18x512xf32, #tpu.memory_space<vmem>>, vector<16x512xf32>
    %35 = arith.truncf %34 : vector<16x512xf32> to vector<16x512xbf16>
    %c0_34 = arith.constant 0 : index
    %c0_35 = arith.constant 0 : index
    %c0_36 = arith.constant 0 : index
    %36 = vector.load %arg4[%c0_34, %c0_35, %c0_36] : memref<3x512x512xbf16, #tpu.memory_space<vmem>>, vector<1x512x512xbf16>
    %37 = vector.shape_cast %36 : vector<1x512x512xbf16> to vector<512x512xbf16>
    %cst_37 = arith.constant dense<0.000000e+00> : vector<16x512xf32>
    %38 = tpu.matmul %35, %37, %cst_37 {dimension_numbers = #tpu.dot_dimension_numbers<[1], [0], [0], [1], [0, 0, 1, 1], [], []>} : vector<16x512xbf16>, vector<512x512xbf16>, vector<16x512xf32> -> vector<16x512xf32>
    %39 = arith.addf %33, %38 : vector<16x512xf32>
    %c1_38 = arith.constant 1 : index
    %c0_39 = arith.constant 0 : index
    %40 = vector.load %arg8[%c1_38, %c0_39] : memref<18x512xf32, #tpu.memory_space<vmem>>, vector<16x512xf32>
    %41 = arith.truncf %40 : vector<16x512xf32> to vector<16x512xbf16>
    %c1_40 = arith.constant 1 : index
    %c0_41 = arith.constant 0 : index
    %c0_42 = arith.constant 0 : index
    %42 = vector.load %arg4[%c1_40, %c0_41, %c0_42] : memref<3x512x512xbf16, #tpu.memory_space<vmem>>, vector<1x512x512xbf16>
    %43 = vector.shape_cast %42 : vector<1x512x512xbf16> to vector<512x512xbf16>
    %cst_43 = arith.constant dense<0.000000e+00> : vector<16x512xf32>
    %44 = tpu.matmul %41, %43, %cst_43 {dimension_numbers = #tpu.dot_dimension_numbers<[1], [0], [0], [1], [0, 0, 1, 1], [], []>} : vector<16x512xbf16>, vector<512x512xbf16>, vector<16x512xf32> -> vector<16x512xf32>
    %45 = arith.addf %39, %44 : vector<16x512xf32>
    %c2_44 = arith.constant 2 : index
    %c0_45 = arith.constant 0 : index
    %46 = vector.load %arg8[%c2_44, %c0_45] : memref<18x512xf32, #tpu.memory_space<vmem>>, vector<16x512xf32>
    %47 = arith.truncf %46 : vector<16x512xf32> to vector<16x512xbf16>
    %c2_46 = arith.constant 2 : index
    %c0_47 = arith.constant 0 : index
    %c0_48 = arith.constant 0 : index
    %48 = vector.load %arg4[%c2_46, %c0_47, %c0_48] : memref<3x512x512xbf16, #tpu.memory_space<vmem>>, vector<1x512x512xbf16>
    %49 = vector.shape_cast %48 : vector<1x512x512xbf16> to vector<512x512xbf16>
    %cst_49 = arith.constant dense<0.000000e+00> : vector<16x512xf32>
    %50 = tpu.matmul %47, %49, %cst_49 {dimension_numbers = #tpu.dot_dimension_numbers<[1], [0], [0], [1], [0, 0, 1, 1], [], []>} : vector<16x512xbf16>, vector<512x512xbf16>, vector<16x512xf32> -> vector<16x512xf32>
    %51 = arith.addf %45, %50 : vector<16x512xf32>
    %cst_50 = arith.constant 0.000000e+00 : f32
    %52 = vector.broadcast %cst_50 : f32 to vector<16x512xf32>
    %53 = arith.maximumf %51, %52 : vector<16x512xf32>
    %c0_51 = arith.constant 0 : index
    %c0_52 = arith.constant 0 : index
    %c0_53 = arith.constant 0 : index
    %54 = vector.load %arg6[%c0_51, %c0_52, %c0_53] : memref<1x16x512xf32, #tpu.memory_space<vmem>>, vector<1x16x512xf32>
    %55 = vector.shape_cast %54 : vector<1x16x512xf32> to vector<16x512xf32>
    %56 = vector.shape_cast %53 : vector<16x512xf32> to vector<1x16x512xf32>
    tpu.vector_store %arg6[%c0_51, %c0_52, %c0_53], %56 {strides = array<i32>} : memref<1x16x512xf32, #tpu.memory_space<vmem>>, vector<1x16x512xf32>,
    return
  }
  func.func @transform_0(%arg0: i32) -> (i32, i32, i32) {
    %c0_i32 = arith.constant 0 : i32
    %c0_i32_0 = arith.constant 0 : i32
    %c0_i32_1 = arith.constant 0 : i32
    return %arg0, %c0_i32, %c0_i32_0 : i32, i32, i32
  }
  func.func @transform_1(%arg0: i32) -> (i32, i32, i32) {
    %c0_i32 = arith.constant 0 : i32
    %c0_i32_0 = arith.constant 0 : i32
    %c0_i32_1 = arith.constant 0 : i32
    %c0_i32_2 = arith.constant 0 : i32
    return %c0_i32, %c0_i32_0, %c0_i32_1 : i32, i32, i32
  }
  func.func @transform_2(%arg0: i32) -> (i32, i32) {
    %c0_i32 = arith.constant 0 : i32
    %c0_i32_0 = arith.constant 0 : i32
    %c0_i32_1 = arith.constant 0 : i32
    return %c0_i32, %c0_i32_0 : i32, i32
  }
  func.func @transform_3(%arg0: i32) -> (i32, i32, i32) {
    %c0_i32 = arith.constant 0 : i32
    %c0_i32_0 = arith.constant 0 : i32
    %c0_i32_1 = arith.constant 0 : i32
    %c0_i32_2 = arith.constant 0 : i32
    return %c0_i32, %c0_i32_0, %c0_i32_1 : i32, i32, i32
  }
  func.func @transform_4(%arg0: i32) -> (i32, i32) {
    %c0_i32 = arith.constant 0 : i32
    %c0_i32_0 = arith.constant 0 : i32
    %c0_i32_1 = arith.constant 0 : i32
    return %c0_i32, %c0_i32_0 : i32, i32
  }
  func.func @transform_5(%arg0: i32) -> (i32, i32, i32) {
    %c0_i32 = arith.constant 0 : i32
    %c0_i32_0 = arith.constant 0 : i32
    %c0_i32_1 = arith.constant 0 : i32
    return %arg0, %c0_i32, %c0_i32_0 : i32, i32, i32
  }
}

</mosaic_0001>

<bundles_post_ra>
// kernel: tile.13
= control target key start
LH: loop header
LB: loop body
LE: loop exit
PB: predicated region body
PF: predicated region fallthrough
CT: control target
= control target key end

     0   :  { %s28_s0 = inlined_call_operand.vmem [shape: f32[32], index: 0, kind: input, shape index: {}]   ;;  %s29_s1 = inlined_call_operand.vmem [shape: f32[16,32], index: 1, kind: output, shape index: {}]  }
   0x1   :  { %v4_v0 = vld [vmem:[%s28_s0] ss:$0 sm:$0xff] }
   0x2   :  { %5 = vst [vmem:[%s29_s1] sm:$0xff] %v4_v0  ;;  %8 = vst [vmem:[%s29_s1 + $0x8] sm:$0xff] %v4_v0 }

// kernel: tile.14
= control target key start
LH: loop header
LB: loop body
LE: loop exit
PB: predicated region body
PF: predicated region fallthrough
CT: control target
= control target key end

     0   :  { %s57_s8 = smov 96   ;;  %vm3_vm0 = vcmask 261120   ;;  %s59_s15 = smov 64   ;;  %vm9_vm1 = vcmask 1048320   ;;  %vm15_vm2 = vcmask 785920   ;;  %vm21_vm3 = vcmask 523520   ;;  %s94_s0 = inlined_call_operand.vmem [shape: f32[16,32], index: 0, kind: input, shape index: {}]   ;;  %s95_s1 = inlined_call_operand.vmem [shape: f32[1,512], index: 1, kind: output, shape index: {}]  }
   0x1   :  { %v48_v0 = vld [vmem:[%s94_s0 + $0x3] ss:$4 sm:$0xf]   ;;  %v49_v1 = vld [vmem:[%s94_s0 + $0x2] ss:$4 sm:$0xf]  }
   0x2   :  { %7 = vrot.lane.b32.xlu0 %v48_v0, %s57_s8  ;;  %v50_v2 = vld [vmem:[%s94_s0 + $0x1] ss:$4 sm:$0xf]   ;;  %v2_v3 = vld [vmem:[%s94_s0] ss:$4 sm:$0xf]  }
   0x3   :  { %s58_s0 = smov 32   ;;  %4 = vst.msk [vmem:[#allocation0] ss:$8 sm:$0xf] %vm3_vm0, %v2_v3  }
   0x4   :  { %19 = vrot.lane.b32.xlu1 %v50_v2, %s58_s0 }
   0x6   :  { %13 = vrot.lane.b32.xlu0 %v49_v1, %s59_s15 }
  0x74   :  { %v8_v4 = vpop.permute.xlu0 %7  }
  0x75   :  { %10 = vst.msk [vmem:[#allocation0] ss:$8 sm:$0xf] %vm9_vm1, %v8_v4  }
  0x76   :  { %v20_v5 = vpop.permute.xlu1 %19  }
  0x78   :  { %v14_v6 = vpop.permute.xlu0 %13  }
  0x79   :  { %16 = vst.msk [vmem:[#allocation0] ss:$8 sm:$0xf] %vm15_vm2, %v14_v6  }
  0x7a   :  { %22 = vst.msk [vmem:[#allocation0] ss:$8 sm:$0xf] %vm21_vm3, %v20_v5  }
  0x81   :  { %v26_v7 = vld [vmem:[#allocation0] sm:$0x1]  ;;  %v30_v8 = vld [vmem:[#allocation0 + $0x8] sm:$0x1]  ;;  %v35_v9 = vld [vmem:[#allocation0 + $0x10] sm:$0x1] }
  0x82   :  { %28 = vst [vmem:[%s95_s1] sm:$0x1] %v26_v7  ;;  %51 = vst [vmem:[%s95_s1 + $0x1] sm:$0x1] %v30_v8  ;;  %v41_v10 = vld [vmem:[#allocation0 + $0x18] sm:$0x1] }
  0x83   :  { %52 = vst [vmem:[%s95_s1 + $0x2] sm:$0x1] %v35_v9  ;;  %53 = vst [vmem:[%s95_s1 + $0x3] sm:$0x1] %v41_v10 }

// kernel: ssd_segmentation_forward.1
= control target key start
LH: loop header
LB: loop body
LE: loop exit
PB: predicated region body
PF: predicated region fallthrough
CT: control target
= control target key end

     0   :  { %s5487_s18 = smov 0   ;;  %s6890_s0 = inlined_call_operand.vmem [shape: f32[2,16,64], index: 0, kind: input, shape index: {}]   ;;  %s6891_s1 = inlined_call_operand.vmem [shape: bf16[3,64,512], index: 1, kind: input, shape index: {}]   ;;  %s6892_s2 = inlined_call_operand.vmem [shape: f32[1,512], index: 2, kind: input, shape index: {}]   ;;  %s6893_s3 = inlined_call_operand.vmem [shape: bf16[3,512,512], index: 3, kind: input, shape index: {}]   ;;  %s6894_s4 = inlined_call_operand.vmem [shape: f32[1,512], index: 4, kind: input, shape index: {}]   ;;  %s6895_s5 = inlined_call_operand.vmem [shape: f32[2,16,512], index: 5, kind: output, shape index: {}]  }
   0x1 LB: > { %s3977_s19 = sadd.s32 4294967295, %s5453_s18   ;;  %p3981_p0 = scmp.ge.s32.totalorder %s5453_s18, 1  ;;  %s5453_s18 = sphi %s5487_s18, %s15_s18  }
   0x2   : > { %p187_p1 = scmp.lt.s32.totalorder %s5453_s18, 3 }
   0x4   : > { %p188_p2 = pnand %p3981_p0, %p187_p1 }
   0x5   : > { %v4798_v0 = vld [vmem:[%s6891_s1 + $0x4] ss:$16 sps:$4 sm:$0xff] (!%p188_p2)   ;;  %p215_p3 = scmp.lt.s32.totalorder (!%p188_p2), %s3977_s19, 1  ;;  %v4800_v1 = vld [vmem:[%s6891_s1] ss:$16 sps:$4 sm:$0xff] (!%p188_p2)   ;;  %v5455_v2 = vmov (!%p188_p2), 0  }
   0x6   : > { %191 = sbr.rel (%p188_p2) target bundleno = 830 (0x33e), region = 40  ;;  %403 = vmatprep.mubr.bf16.mxu0 (!%p188_p2), %v5455_v2  ;;  %vm226_vm0 = vcmask (!%p188_p2), 523264   ;;  %446 = vmatprep.mubr.bf16.mxu1 (!%p188_p2), %v5455_v2  ;;  %v4801_v3 = vld [vmem:[%s6891_s1 + $0x24] ss:$16 sps:$4 sm:$0xff] (!%p188_p2)   ;;  %v5456_v4 = vmov (!%p188_p2), 0.0   ;;  %vm229_vm1 = vcmask (!%p188_p2), 517120  }
   0x7   : > { %371 = vmatprep.subr.bf16.mxu0 (!%p188_p2), %v4798_v0  ;;  %227 = vst.msk [vmem:[#allocation2] sm:$0xff] (!%p188_p2), %vm226_vm0, %v5456_v4  ;;  %228 = vst.msk [vmem:[#allocation2 + $0x8] sm:$0xff] (!%p188_p2), %vm226_vm0, %v5456_v4  ;;  %v4803_v5 = vld [vmem:[%s6891_s1 + $0x20] ss:$16 sps:$4 sm:$0xff] (!%p188_p2)   ;;  %v4804_v6 = vld [vmem:[%s6891_s1 + $0x44] ss:$16 sps:$4 sm:$0xff] (!%p188_p2)  }
   0x8   : > { %231 = vst [vmem:[#allocation3] sm:$0xff] (!%p188_p2), %v5456_v4  ;;  %232 = vst [vmem:[#allocation3 + $0x8] sm:$0xff] (!%p188_p2), %v5456_v4  ;;  %372 = vmatpush1.bf16.msra.mxu0 (!%p188_p2), %v4800_v1  ;;  %v4806_v7 = vld [vmem:[%s6891_s1 + $0x40] ss:$16 sps:$4 sm:$0xff] (!%p188_p2)   ;;  %v4807_v10 = vld [vmem:[%s6891_s1 + $0x64] ss:$16 sps:$4 sm:$0xff] (!%p188_p2)  }
   0x9   : > { %233 = vst [vmem:[#allocation3 + $0x10] sm:$0xff] (!%p188_p2), %v5456_v4  ;;  %234 = vst [vmem:[#allocation3 + $0x18] sm:$0xff] (!%p188_p2), %v5456_v4  ;;  %373 = vmatprep.subr.bf16.mxu0 (!%p188_p2), %v4801_v3  ;;  %v4809_v11 = vld [vmem:[%s6891_s1 + $0x60] ss:$16 sps:$4 sm:$0xff] (!%p188_p2)   ;;  %v4819_v12 = vld [vmem:[%s6891_s1 + $0xc] ss:$16 sps:$4 sm:$0xff] (!%p188_p2)  }
   0xa   : > { %239 = vst [vmem:[#allocation3 + $0x40] sm:$0x3] (!%p188_p2), %v5456_v4  ;;  %240 = vst [vmem:[#allocation3 + $0x48] sm:$0x3] (!%p188_p2), %v5456_v4  ;;  %v4821_v13 = vld [vmem:[%s6891_s1 + $0x8] ss:$16 sps:$4 sm:$0xff] (!%p188_p2)   ;;  %414 = vmatprep.subr.bf16.mxu1 (!%p188_p2), %v4819_v12 }
   0xb   : > { %241 = vst [vmem:[#allocation3 + $0x50] sm:$0x3] (!%p188_p2), %v5456_v4  ;;  %242 = vst [vmem:[#allocation3 + $0x58] sm:$0x3] (!%p188_p2), %v5456_v4  ;;  %v4812_v14 = vld [vmem:[%s6891_s1 + $0x84] ss:$16 sps:$4 sm:$0xff] (!%p188_p2)   ;;  %415 = vmatpush1.bf16.msra.mxu1 (!%p188_p2), %v4821_v13 }
   0xc   : > { %230 = vst.msk [vmem:[#allocation2 + $0x10] sm:$0x3] (!%p188_p2), %vm229_vm1, %v5456_v4  ;;  %374 = vmatpush1.bf16.msra.mxu0 (!%p188_p2), %v4803_v5  ;;  %v4825_v15 = vld [vmem:[%s6891_s1 + $0x2c] ss:$16 sps:$4 sm:$0xff] (!%p188_p2)   ;;  %v4827_v16 = vld [vmem:[%s6891_s1 + $0x28] ss:$16 sps:$4 sm:$0xff] (!%p188_p2)  }
   0xd   : > { %s6897_s19 = smov (!%p215_p3, %s3977_s19), 1  ;;  %375 = vmatprep.subr.bf16.mxu0 %v4804_v6  ;;  %v4810_v18 = vld [vmem:[%s6891_s1 + $0x80] ss:$16 sps:$4 sm:$0xff]   ;;  %416 = vmatprep.subr.bf16.mxu1 %v4825_v15  ;;  %v4815_v21 = vld [vmem:[%s6891_s1 + $0xa4] ss:$16 sps:$4 sm:$0xff]   ;;  %vm875_vm2 = vcmask 1040384  }
   0xe   : > { %s4714_s30 = sshll.u32 %s6897_s19, 4  ;;  %v4831_v22 = vld [vmem:[%s6891_s1 + $0x4c] ss:$16 sps:$4 sm:$0xff]   ;;  %v4833_v23 = vld [vmem:[%s6891_s1 + $0x48] ss:$16 sps:$4 sm:$0xff]   ;;  %vm3069_vm4 = vcmask 1046528  }
   0xf   : > { %s219_s8 = scalar_lea.vmem %s6890_s0, %s4714_s30  ;;  %417 = vmatpush1.bf16.msra.mxu1 %v4827_v16  ;;  %v4813_v24 = vld [vmem:[%s6891_s1 + $0xa0] ss:$16 sps:$4 sm:$0xff]   ;;  %v4818_v25 = vld [vmem:[%s6891_s1 + $0xc4] ss:$16 sps:$4 sm:$0xff]   ;;  %v4837_v26 = vld [vmem:[%s6891_s1 + $0x6c] ss:$16 sps:$4 sm:$0xff]  }
  0x10   : > { %v243_v8 = vld [vmem:[%s219_s8] sm:$0xff]  ;;  %v244_v9 = vld [vmem:[%s219_s8 + $0x8] sm:$0xff]  ;;  %376 = vmatpush1.bf16.msra.mxu0 %v4806_v7  ;;  %418 = vmatprep.subr.bf16.mxu1 %v4831_v22  ;;  %vm2043_vm3 = vsmask.f32 7424  ;;  %s4715_s16 = sshll.u32 %s6897_s19, 6 }
  0x11   : > { %245 = vst.msk [vmem:[#allocation2 + $0x1] sm:$0xff] %vm226_vm0, %v243_v8  ;;  %246 = vst.msk [vmem:[#allocation2 + $0x9] sm:$0xff] %vm226_vm0, %v244_v9  ;;  %377 = vmatprep.subr.bf16.mxu0 %v4807_v10  ;;  %v4839_v27 = vld [vmem:[%s6891_s1 + $0x68] ss:$16 sps:$4 sm:$0xff]   ;;  %v4816_v28 = vld [vmem:[%s6891_s1 + $0xc0] ss:$16 sps:$4 sm:$0xff]   ;;  %s224_s21 = scalar_lea.vmem %s6895_s5, %s4715_s16 }
  0x12   : > { %v4845_v29 = vld [vmem:[%s6891_s1 + $0x8c] ss:$16 sps:$4 sm:$0xff]   ;;  %v4824_v30 = vld [vmem:[%s6891_s1 + $0xe4] ss:$16 sps:$4 sm:$0xff]   ;;  %v4843_v31 = vld [vmem:[%s6891_s1 + $0x88] ss:$16 sps:$4 sm:$0xff]  }
  0x13   : > { %419 = vmatpush1.bf16.msra.mxu1 %v4833_v23  ;;  %v4822_v32 = vld [vmem:[%s6891_s1 + $0xe0] ss:$16 sps:$4 sm:$0xff]   ;;  %v4851_v33 = vld [vmem:[%s6891_s1 + $0xac] ss:$16 sps:$4 sm:$0xff]   ;;  %v4830_v36 = vld [vmem:[%s6891_s1 + $0x104] ss:$16 sps:$4 sm:$0xff]  }
  0x14   : > { %378 = vmatpush1.bf16.msra.mxu0 %v4809_v11  ;;  %420 = vmatprep.subr.bf16.mxu1 %v4837_v26  ;;  %v4849_v37 = vld [vmem:[%s6891_s1 + $0xa8] ss:$16 sps:$4 sm:$0xff]   ;;  %v4854_v39 = vld [vmem:[%s6891_s1 + $0xcc] ss:$16 sps:$4 sm:$0xff]   ;;  %v4828_v40 = vld [vmem:[%s6891_s1 + $0x100] ss:$16 sps:$4 sm:$0xff]  }
  0x15   : > { %568 = vmatprep.subr.bf16.mxu0 %v4812_v14  ;;  %v4836_v41 = vld [vmem:[%s6891_s1 + $0x124] ss:$16 sps:$4 sm:$0xff]   ;;  %v4852_v42 = vld [vmem:[%s6891_s1 + $0xc8] ss:$16 sps:$4 sm:$0xff]   ;;  %v4857_v43 = vld [vmem:[%s6891_s1 + $0xec] ss:$16 sps:$4 sm:$0xff]  }
  0x16   : > { %v4834_v44 = vld [vmem:[%s6891_s1 + $0x120] ss:$16 sps:$4 sm:$0xff]   ;;  %v4842_v45 = vld [vmem:[%s6891_s1 + $0x144] ss:$16 sps:$4 sm:$0xff]   ;;  %v4855_v46 = vld [vmem:[%s6891_s1 + $0xe8] ss:$16 sps:$4 sm:$0xff]  }
  0x17   : > { %421 = vmatpush1.bf16.msra.mxu1 %v4839_v27  ;;  %v4860_v47 = vld [vmem:[%s6891_s1 + $0x10c] ss:$16 sps:$4 sm:$0xff]   ;;  %v4840_v48 = vld [vmem:[%s6891_s1 + $0x140] ss:$16 sps:$4 sm:$0xff]   ;;  %v4848_v49 = vld [vmem:[%s6891_s1 + $0x164] ss:$16 sps:$4 sm:$0xff]  }
  0x18   : > { %v269_v17 = vld [vmem:[#allocation2] sm:$0xff]  ;;  %v270_v19 = vld [vmem:[#allocation2 + $0x8] sm:$0xff]  ;;  %611 = vmatprep.subr.bf16.mxu1 %v4845_v29 }
  0x19   : > { %v271_v20 = vpack.c.bf16 %v270_v19, %v269_v17  ;;  %v465_v34 = vld [vmem:[#allocation2 + $0x1] sm:$0xff]  ;;  %v466_v35 = vld [vmem:[#allocation2 + $0x9] sm:$0xff] }
  0x1a   : > { %v467_v38 = vpack.c.bf16 %v466_v35, %v465_v34  ;;  %v4858_v50 = vld [vmem:[%s6891_s1 + $0x108] ss:$16 sps:$4 sm:$0xff]   ;;  %v4846_v51 = vld [vmem:[%s6891_s1 + $0x160] ss:$16 sps:$4 sm:$0xff]   ;;  %v4863_v52 = vld [vmem:[%s6891_s1 + $0x12c] ss:$16 sps:$4 sm:$0xff]  }
  0x1b   : > { %4002 = vmatmul.mubr.msk.bf16.vlgmr.msra.gmra.mrb[0].mxu0 %vm226_vm0, %v271_v20  ;;  %4003 = vmatmul.mubr.msk.bf16.vlgmr.msra.gmra.mrb[0].mxu1 %vm226_vm0, %v271_v20  ;;  %v662_v53 = vld [vmem:[#allocation2 + $0x2] sm:$0xff]  ;;  %v663_v54 = vld [vmem:[#allocation2 + $0xa] sm:$0xff] }
  0x1c   : > { %569 = vmatpush1.bf16.msra.mxu0 %v4810_v18  ;;  %600 = vmatprep.mubr.bf16.mxu0 %v5455_v2  ;;  %v4872_v55 = vld [vmem:[%s6893_s3 + $0x4] ss:$16 sps:$4 sm:$0xff]   ;;  %v4861_v56 = vld [vmem:[%s6891_s1 + $0x128] ss:$16 sps:$4 sm:$0xff]   ;;  %v664_v57 = vpack.c.bf16 %v663_v54, %v662_v53  ;;  %v4866_v58 = vld [vmem:[%s6891_s1 + $0x14c] ss:$16 sps:$4 sm:$0xff]  }
  0x1d   : > { %570 = vmatprep.subr.bf16.mxu0 %v4815_v21  ;;  %612 = vmatpush1.bf16.msra.mxu1 %v4843_v31  ;;  %v4870_v59 = vld [vmem:[%s6893_s3] ss:$16 sps:$4 sm:$0xff]   ;;  %v4878_v60 = vld [vmem:[%s6893_s3 + $0x24] ss:$16 sps:$4 sm:$0xff]   ;;  %v4864_v61 = vld [vmem:[%s6891_s1 + $0x148] ss:$16 sps:$4 sm:$0xff]  }
  0x1e   : > { %643 = vmatprep.mubr.bf16.mxu1 %v5455_v2  ;;  %613 = vmatprep.subr.bf16.mxu1 %v4851_v33  ;;  %v4869_v62 = vld [vmem:[%s6891_s1 + $0x16c] ss:$16 sps:$4 sm:$0xff]   ;;  %v4876_v63 = vld [vmem:[%s6893_s3 + $0x20] ss:$16 sps:$4 sm:$0xff]   ;;  %v4884_v0 = vld [vmem:[%s6893_s3 + $0x44] ss:$16 sps:$4 sm:$0xff]  }
  0x1f   : > { %v4867_v1 = vld [vmem:[%s6891_s1 + $0x168] ss:$16 sps:$4 sm:$0xff]   ;;  %v4882_v3 = vld [vmem:[%s6893_s3 + $0x40] ss:$16 sps:$4 sm:$0xff]   ;;  %v4890_v4 = vld [vmem:[%s6893_s3 + $0x64] ss:$16 sps:$4 sm:$0xff]  }
  0x20   : > { %571 = vmatpush1.bf16.msra.mxu0 %v4813_v24  ;;  %v4873_v5 = vld [vmem:[%s6893_s3 + $0x8] ss:$16 sps:$4 sm:$0xff]   ;;  %v4881_v6 = vld [vmem:[%s6893_s3 + $0x2c] ss:$16 sps:$4 sm:$0xff]   ;;  %v4888_v7 = vld [vmem:[%s6893_s3 + $0x60] ss:$16 sps:$4 sm:$0xff]  }
  0x21   : > { %572 = vmatprep.subr.bf16.mxu0 %v4818_v25  ;;  %614 = vmatpush1.bf16.msra.mxu1 %v4849_v37  ;;  %v4896_v8 = vld [vmem:[%s6893_s3 + $0x84] ss:$16 sps:$4 sm:$0xff]   ;;  %v4879_v9 = vld [vmem:[%s6893_s3 + $0x28] ss:$16 sps:$4 sm:$0xff]   ;;  %v4887_v10 = vld [vmem:[%s6893_s3 + $0x4c] ss:$16 sps:$4 sm:$0xff]  }
  0x22   : > { %615 = vmatprep.subr.bf16.mxu1 %v4854_v39  ;;  %v4885_v11 = vld [vmem:[%s6893_s3 + $0x48] ss:$16 sps:$4 sm:$0xff]   ;;  %v4894_v12 = vld [vmem:[%s6893_s3 + $0x80] ss:$16 sps:$4 sm:$0xff]   ;;  %v4893_v13 = vld [vmem:[%s6893_s3 + $0x6c] ss:$16 sps:$4 sm:$0xff]  }
  0x23   : > { %v4902_v14 = vld [vmem:[%s6893_s3 + $0xa4] ss:$16 sps:$4 sm:$0xff]   ;;  %v4900_v15 = vld [vmem:[%s6893_s3 + $0xa0] ss:$16 sps:$4 sm:$0xff]   ;;  %v4891_v17 = vld [vmem:[%s6893_s3 + $0x68] ss:$16 sps:$4 sm:$0xff]  }
  0x24   : > { %573 = vmatpush1.bf16.msra.mxu0 %v4816_v28  ;;  %v4908_v16 = vld [vmem:[%s6893_s3 + $0xc4] ss:$16 sps:$4 sm:$0xff]   ;;  %v4899_v18 = vld [vmem:[%s6893_s3 + $0x8c] ss:$16 sps:$4 sm:$0xff]   ;;  %v4906_v19 = vld [vmem:[%s6893_s3 + $0xc0] ss:$16 sps:$4 sm:$0xff]  }
  0x25   : > { %574 = vmatprep.subr.bf16.mxu0 %v4824_v30  ;;  %616 = vmatpush1.bf16.msra.mxu1 %v4852_v42  ;;  %v4914_v20 = vld [vmem:[%s6893_s3 + $0xe4] ss:$16 sps:$4 sm:$0xff]   ;;  %v4897_v21 = vld [vmem:[%s6893_s3 + $0x88] ss:$16 sps:$4 sm:$0xff]   ;;  %v4905_v22 = vld [vmem:[%s6893_s3 + $0xac] ss:$16 sps:$4 sm:$0xff]  }
  0x26   : > { %617 = vmatprep.subr.bf16.mxu1 %v4857_v43  ;;  %v4912_v23 = vld [vmem:[%s6893_s3 + $0xe0] ss:$16 sps:$4 sm:$0xff]   ;;  %v4920_v24 = vld [vmem:[%s6893_s3 + $0x104] ss:$16 sps:$4 sm:$0xff]   ;;  %v4903_v25 = vld [vmem:[%s6893_s3 + $0xa8] ss:$16 sps:$4 sm:$0xff]  }
  0x27   : > { %v4911_v26 = vld [vmem:[%s6893_s3 + $0xcc] ss:$16 sps:$4 sm:$0xff]   ;;  %v4918_v27 = vld [vmem:[%s6893_s3 + $0x100] ss:$16 sps:$4 sm:$0xff]   ;;  %v4926_v28 = vld [vmem:[%s6893_s3 + $0x124] ss:$16 sps:$4 sm:$0xff]  }
  0x28   : > { %575 = vmatpush1.bf16.msra.mxu0 %v4822_v32  ;;  %v4909_v29 = vld [vmem:[%s6893_s3 + $0xc8] ss:$16 sps:$4 sm:$0xff]   ;;  %v4917_v30 = vld [vmem:[%s6893_s3 + $0xec] ss:$16 sps:$4 sm:$0xff]   ;;  %v4924_v31 = vld [vmem:[%s6893_s3 + $0x120] ss:$16 sps:$4 sm:$0xff]  }
  0x29   : > { %765 = vmatprep.subr.bf16.mxu0 %v4830_v36  ;;  %618 = vmatpush1.bf16.msra.mxu1 %v4855_v46  ;;  %v4932_v32 = vld [vmem:[%s6893_s3 + $0x144] ss:$16 sps:$4 sm:$0xff]   ;;  %v4915_v33 = vld [vmem:[%s6893_s3 + $0xe8] ss:$16 sps:$4 sm:$0xff]   ;;  %v4923_v34 = vld [vmem:[%s6893_s3 + $0x10c] ss:$16 sps:$4 sm:$0xff]  }
  0x2a   : > { %808 = vmatprep.subr.bf16.mxu1 %v4860_v47  ;;  %v4930_v35 = vld [vmem:[%s6893_s3 + $0x140] ss:$16 sps:$4 sm:$0xff]   ;;  %v4921_v36 = vld [vmem:[%s6893_s3 + $0x108] ss:$16 sps:$4 sm:$0xff]   ;;  %v4929_v37 = vld [vmem:[%s6893_s3 + $0x12c] ss:$16 sps:$4 sm:$0xff]  }
  0x2b   : > { %4036 = vmatmul.mubr.msk.bf16.vlgmr.msra.gmra.mrb[0].mxu0 %vm226_vm0, %v467_v38  ;;  %v4935_v39 = vld [vmem:[%s6893_s3 + $0x14c] ss:$16 sps:$4 sm:$0xff]   ;;  %v4936_v43 = vld [vmem:[%s6893_s3 + $0x160] ss:$16 sps:$4 sm:$0xff]   ;;  %v4956_v53 = vld [vmem:[%s6893_s3 + $0x1c4] ss:$16 sps:$4 sm:$0xff]  }
  0x2c   : > { %766 = vmatpush1.bf16.msra.mxu0 %v4828_v40  ;;  %797 = vmatprep.mubr.bf16.mxu0 %v5455_v2  ;;  %v4933_v40 = vld [vmem:[%s6893_s3 + $0x148] ss:$16 sps:$4 sm:$0xff]   ;;  %v4941_v42 = vld [vmem:[%s6893_s3 + $0x16c] ss:$16 sps:$4 sm:$0xff]   ;;  %v4942_v47 = vld [vmem:[%s6893_s3 + $0x180] ss:$16 sps:$4 sm:$0xff]  }
  0x2d   : > { %767 = vmatprep.subr.bf16.mxu0 %v4836_v41  ;;  %4037 = vmatmul.mubr.msk.bf16.vlgmr.msra.gmra.mrb[0].mxu1 %vm226_vm0, %v467_v38  ;;  %v4927_v38 = vld [vmem:[%s6893_s3 + $0x128] ss:$16 sps:$4 sm:$0xff]   ;;  %v4938_v41 = vld [vmem:[%s6893_s3 + $0x164] ss:$16 sps:$4 sm:$0xff]   ;;  %v4947_v46 = vld [vmem:[%s6893_s3 + $0x18c] ss:$16 sps:$4 sm:$0xff]  }
  0x2e   : > { %809 = vmatpush1.bf16.msra.mxu1 %v4858_v50  ;;  %840 = vmatprep.mubr.bf16.mxu1 %v5455_v2  ;;  %v4875_v2 = vld [vmem:[%s6893_s3 + $0xc] ss:$16 sps:$4 sm:$0xff]  }
  0x2f   : > { %810 = vmatprep.subr.bf16.mxu1 %v4863_v52  ;;  %v4953_v50 = vld [vmem:[%s6893_s3 + $0x1ac] ss:$16 sps:$4 sm:$0xff]   ;;  %v4951_v52 = vld [vmem:[%s6893_s3 + $0x1a8] ss:$16 sps:$4 sm:$0xff]  }
  0x30   : > { %768 = vmatpush1.bf16.msra.mxu0 %v4834_v44  ;;  %v4939_v44 = vld [vmem:[%s6893_s3 + $0x168] ss:$16 sps:$4 sm:$0xff]   ;;  %v4959_v54 = vld [vmem:[%s6893_s3 + $0x1cc] ss:$16 sps:$4 sm:$0xff]  }
  0x31   : > { %769 = vmatprep.subr.bf16.mxu0 %v4842_v45  ;;  %v4944_v45 = vld [vmem:[%s6893_s3 + $0x184] ss:$16 sps:$4 sm:$0xff]  }
  0x32   : > { %811 = vmatpush1.bf16.msra.mxu1 %v4861_v56  ;;  %v4957_v56 = vld [vmem:[%s6893_s3 + $0x1c8] ss:$16 sps:$4 sm:$0xff]  }
  0x33   : > { %812 = vmatprep.subr.bf16.mxu1 %v4866_v58  ;;  %v4962_v58 = vld [vmem:[%s6893_s3 + $0x1e4] ss:$16 sps:$4 sm:$0xff]  }
  0x34   : > { %770 = vmatpush1.bf16.msra.mxu0 %v4840_v48  ;;  %v4945_v48 = vld [vmem:[%s6893_s3 + $0x188] ss:$16 sps:$4 sm:$0xff]  }
  0x35   : > { %771 = vmatprep.subr.bf16.mxu0 %v4848_v49  ;;  %v4950_v49 = vld [vmem:[%s6893_s3 + $0x1a4] ss:$16 sps:$4 sm:$0xff]  }
  0x36   : > { %813 = vmatpush1.bf16.msra.mxu1 %v4864_v61  ;;  %v4968_v61 = vld [vmem:[%s6893_s3 + $0x204] ss:$16 sps:$4 sm:$0xff]  }
  0x37   : > { %814 = vmatprep.subr.bf16.mxu1 %v4869_v62  ;;  %v4971_v62 = vld [vmem:[%s6893_s3 + $0x20c] ss:$16 sps:$4 sm:$0xff]  }
  0x38   : > { %772 = vmatpush1.bf16.msra.mxu0 %v4846_v51  ;;  %v4948_v51 = vld [vmem:[%s6893_s3 + $0x1a0] ss:$16 sps:$4 sm:$0xff]  }
  0x39   : > { %1714 = vmatprep.subr.bf16.mxu0 %v4872_v55  ;;  %v4954_v55 = vld [vmem:[%s6893_s3 + $0x1c0] ss:$16 sps:$4 sm:$0xff]  }
  0x3a   : > { %815 = vmatpush1.bf16.msra.mxu1 %v4867_v1 }
  0x3b   : > { %4070 = vmatmul.mubr.msk.bf16.vlgmr.msra.gmra.mrb[0].mxu0 %vm226_vm0, %v664_v57  ;;  %1800 = vmatprep.subr.bf16.mxu1 %v4875_v2  ;;  %v247_v2 = vld [vmem:[%s6892_s2] sm:$0xf] }
  0x3c   : > { %1715 = vmatpush1.bf16.msra.mxu0 %v4870_v59  ;;  %v4963_v59 = vld [vmem:[%s6893_s3 + $0x1e8] ss:$16 sps:$4 sm:$0xff]  }
  0x3d   : > { %1716 = vmatprep.subr.bf16.mxu0 %v4878_v60  ;;  %4071 = vmatmul.mubr.msk.bf16.vlgmr.msra.gmra.mrb[0].mxu1 %vm226_vm0, %v664_v57  ;;  %v4960_v57 = vld [vmem:[%s6893_s3 + $0x1e0] ss:$16 sps:$4 sm:$0xff]   ;;  %v4965_v60 = vld [vmem:[%s6893_s3 + $0x1ec] ss:$16 sps:$4 sm:$0xff]  }
  0x3e   : > { %1801 = vmatpush1.bf16.msra.mxu1 %v4873_v5 }
  0x3f   : > { %1802 = vmatprep.subr.bf16.mxu1 %v4881_v6 }
  0x40   : > { %1717 = vmatpush1.bf16.msra.mxu0 %v4876_v63  ;;  %v249_v63 = vlaneseq }
  0x41   : > { %1718 = vmatprep.subr.bf16.mxu0 %v4884_v0 }
  0x42   : > { %1803 = vmatpush1.bf16.msra.mxu1 %v4879_v9  ;;  %v5859_v0 = vshrl.u32 %v249_v63, 7 }
  0x43   : > { %1804 = vmatprep.subr.bf16.mxu1 %v4887_v10 }
  0x44   : > { %1719 = vmatpush1.bf16.msra.mxu0 %v4882_v3  ;;  %v251_v1 = vsub.s32 0, %v5859_v0  ;;  %v255_v3 = vsub.s32 1, %v5859_v0 }
  0x45   : > { %1720 = vmatprep.subr.bf16.mxu0 %v4890_v4 }
  0x46   : > { %1805 = vmatpush1.bf16.msra.mxu1 %v4885_v11  ;;  %v252_v4 = vrot.slane %v247_v2, %v251_v1  ;;  %v256_v5 = vrot.slane %v247_v2, %v255_v3 }
  0x47   : > { %1806 = vmatprep.subr.bf16.mxu1 %v4893_v13 }
  0x48   : > { %1721 = vmatpush1.bf16.msra.mxu0 %v4888_v7 }
  0x49   : > { %1722 = vmatprep.subr.bf16.mxu0 %v4896_v8 }
  0x4a   : > { %1807 = vmatpush1.bf16.msra.mxu1 %v4891_v17  ;;  %v263_v17 = vsub.s32 3, %v5859_v0 }
  0x4b   : > { %1808 = vmatprep.subr.bf16.mxu1 %v4899_v18 }
  0x4c   : > { %1723 = vmatpush1.bf16.msra.mxu0 %v4894_v12 }
  0x4d   : > { %1724 = vmatprep.subr.bf16.mxu0 %v4902_v14  ;;  %v259_v14 = vsub.s32 2, %v5859_v0 }
  0x4e   : > { %1809 = vmatpush1.bf16.msra.mxu1 %v4897_v21 }
  0x4f   : > { %1810 = vmatprep.subr.bf16.mxu1 %v4905_v22 }
  0x50   : > { %1725 = vmatpush1.bf16.msra.mxu0 %v4900_v15 }
  0x51   : > { %1726 = vmatprep.subr.bf16.mxu0 %v4908_v16 }
  0x52   : > { %1811 = vmatpush1.bf16.msra.mxu1 %v4903_v25  ;;  %v264_v25 = vrot.slane %v247_v2, %v263_v17 }
  0x53   : > { %1812 = vmatprep.subr.bf16.mxu1 %v4911_v26 }
  0x54   : > { %1727 = vmatpush1.bf16.msra.mxu0 %v4906_v19 }
  0x55   : > { %1728 = vmatprep.subr.bf16.mxu0 %v4914_v20 }
  0x56   : > { %1813 = vmatpush1.bf16.msra.mxu1 %v4909_v29 }
  0x57   : > { %1814 = vmatprep.subr.bf16.mxu1 %v4917_v30 }
  0x58   : > { %1729 = vmatpush1.bf16.msra.mxu0 %v4912_v23  ;;  %v260_v23 = vrot.slane %v247_v2, %v259_v14  ;;  %v4984_v2 = vld [vmem:[%s6893_s3 + $0x260] ss:$16 sps:$4 sm:$0xff]  }
  0x59   : > { %1730 = vmatprep.subr.bf16.mxu0 %v4920_v24 }
  0x5a   : > { %1815 = vmatpush1.bf16.msra.mxu1 %v4915_v33 }
  0x5b   : > { %1816 = vmatprep.subr.bf16.mxu1 %v4923_v34 }
  0x5c   : > { %1731 = vmatpush1.bf16.msra.mxu0 %v4918_v27 }
  0x5d   : > { %1732 = vmatprep.subr.bf16.mxu0 %v4926_v28 }
  0x5e   : > { %1817 = vmatpush1.bf16.msra.mxu1 %v4921_v36 }
  0x5f   : > { %1818 = vmatprep.subr.bf16.mxu1 %v4929_v37 }
  0x60   : > { %1733 = vmatpush1.bf16.msra.mxu0 %v4924_v31 }
  0x61   : > { %1734 = vmatprep.subr.bf16.mxu0 %v4932_v32 }
  0x62   : > { %1819 = vmatpush1.bf16.msra.mxu1 %v4927_v38 }
  0x63   : > { %1820 = vmatprep.subr.bf16.mxu1 %v4935_v39 }
  0x64   : > { %1735 = vmatpush1.bf16.msra.mxu0 %v4930_v35 }
  0x65   : > { %1736 = vmatprep.subr.bf16.mxu0 %v4938_v41 }
  0x66   : > { %1821 = vmatpush1.bf16.msra.mxu1 %v4933_v40 }
  0x67   : > { %1822 = vmatprep.subr.bf16.mxu1 %v4941_v42 }
  0x68   : > { %1737 = vmatpush1.bf16.msra.mxu0 %v4936_v43  ;;  %v4966_v43 = vld [vmem:[%s6893_s3 + $0x200] ss:$16 sps:$4 sm:$0xff]  }
  0x69   : > { %1738 = vmatprep.subr.bf16.mxu0 %v4944_v45 }
  0x6a   : > { %1823 = vmatpush1.bf16.msra.mxu1 %v4939_v44  ;;  %v4969_v44 = vld [vmem:[%s6893_s3 + $0x208] ss:$16 sps:$4 sm:$0xff]  }
  0x6b   : > { %1824 = vmatprep.subr.bf16.mxu1 %v4947_v46 }
  0x6c   : > { %1739 = vmatpush1.bf16.msra.mxu0 %v4942_v47 }
  0x6d   : > { %1740 = vmatprep.subr.bf16.mxu0 %v4950_v49  ;;  %v4977_v49 = vld [vmem:[%s6893_s3 + $0x22c] ss:$16 sps:$4 sm:$0xff]  }
  0x6e   : > { %1825 = vmatpush1.bf16.msra.mxu1 %v4945_v48  ;;  %v4974_v48 = vld [vmem:[%s6893_s3 + $0x224] ss:$16 sps:$4 sm:$0xff]  }
  0x6f   : > { %1826 = vmatprep.subr.bf16.mxu1 %v4953_v50 }
  0x70   : > { %1741 = vmatpush1.bf16.msra.mxu0 %v4948_v51 }
  0x71   : > { %1742 = vmatprep.subr.bf16.mxu0 %v4956_v53  ;;  %v4972_v53 = vld [vmem:[%s6893_s3 + $0x220] ss:$16 sps:$4 sm:$0xff]  }
  0x72   : > { %1827 = vmatpush1.bf16.msra.mxu1 %v4951_v52 }
  0x73   : > { %1828 = vmatprep.subr.bf16.mxu1 %v4959_v54  ;;  %v4975_v54 = vld [vmem:[%s6893_s3 + $0x228] ss:$16 sps:$4 sm:$0xff]  }
  0x74   : > { %1743 = vmatpush1.bf16.msra.mxu0 %v4954_v55 }
  0x75   : > { %1744 = vmatprep.subr.bf16.mxu0 %v4962_v58  ;;  %v4978_v58 = vld [vmem:[%s6893_s3 + $0x240] ss:$16 sps:$4 sm:$0xff]  }
  0x76   : > { %1829 = vmatpush1.bf16.msra.mxu1 %v4957_v56  ;;  %v4980_v56 = vld [vmem:[%s6893_s3 + $0x244] ss:$16 sps:$4 sm:$0xff]  }
  0x77   : > { %1830 = vmatprep.subr.bf16.mxu1 %v4965_v60  ;;  %v4986_v60 = vld [vmem:[%s6893_s3 + $0x264] ss:$16 sps:$4 sm:$0xff]  }
  0x78   : > { %1745 = vmatpush1.bf16.msra.mxu0 %v4960_v57  ;;  %v4983_v57 = vld [vmem:[%s6893_s3 + $0x24c] ss:$16 sps:$4 sm:$0xff]  }
  0x79   : > { %1757 = vmatprep.subr.bf16.mxu0 %v4968_v61  ;;  %v4989_v61 = vld [vmem:[%s6893_s3 + $0x26c] ss:$16 sps:$4 sm:$0xff]  }
  0x7a   : > { %1831 = vmatpush1.bf16.msra.mxu1 %v4963_v59  ;;  %v4981_v59 = vld [vmem:[%s6893_s3 + $0x248] ss:$16 sps:$4 sm:$0xff]  }
  0x7b   : > { %1843 = vmatprep.subr.bf16.mxu1 %v4971_v62 }
 0x10e   : > { %v799_v6 = vpop.f32.mrb[0].mxu0 }
 0x10f   : > { %v4716_v7 = vadd.f32 %v799_v6, %v252_v4  ;;  %v801_v8 = vpop.f32.mrb[1].mxu0  ;;  %v4987_v6 = vld [vmem:[%s6893_s3 + $0x268] ss:$16 sps:$4 sm:$0xff]  }
 0x110   : > { %v4717_v9 = vadd.f32 %v801_v8, %v256_v5  ;;  %v803_v10 = vpop.f32.mrb[2].mxu0  ;;  %v842_v28 = vpop.f32.mrb[0].mxu1 }
 0x111   : > { %v859_v11 = vmax.f32 %v4716_v7, 0.0  ;;  %v4718_v12 = vadd.f32 %v803_v10, %v252_v4  ;;  %v805_v13 = vpop.f32.mrb[3].mxu0  ;;  %v4720_v29 = vadd.f32 %v842_v28, %v260_v23  ;;  %v844_v30 = vpop.f32.mrb[1].mxu1  ;;  %v4993_v28 = vld [vmem:[%s6893_s3 + $0x288] ss:$16 sps:$4 sm:$0xff]  }
 0x112   : > { %v860_v15 = vmax.f32 %v4717_v9, 0.0  ;;  %v4719_v16 = vadd.f32 %v805_v13, %v256_v5  ;;  %v4721_v31 = vadd.f32 %v844_v30, %v264_v25  ;;  %v846_v32 = vpop.f32.mrb[2].mxu1 }
 0x113   : > { %v876_v18 = vrot.slane %v859_v11, 7  ;;  %v863_v19 = vmax.f32 %v4718_v12, 0.0  ;;  %v861_v33 = vmax.f32 %v4720_v29, 0.0  ;;  %v4722_v34 = vadd.f32 %v846_v32, %v260_v23  ;;  %v848_v35 = vpop.f32.mrb[3].mxu1 }
 0x114   : > { %v877_v20 = vrot.slane %v860_v15, 7  ;;  %v864_v21 = vmax.f32 %v4719_v16, 0.0  ;;  %v862_v37 = vmax.f32 %v4721_v31, 0.0  ;;  %v4723_v38 = vadd.f32 %v848_v35, %v264_v25  ;;  %v4992_v15 = vld [vmem:[%s6893_s3 + $0x284] ss:$16 sps:$4 sm:$0xff]  }
 0x115   : > { %900 = vst [vmem:[#allocation3] sm:$0xfe] %v876_v18  ;;  %v880_v22 = vrot.slane %v863_v19, 7  ;;  %v878_v40 = vrot.slane %v861_v33, 7  ;;  %v865_v41 = vmax.f32 %v4722_v34, 0.0 }
 0x116   : > { %901 = vst [vmem:[#allocation3 + $0x8] sm:$0xfe] %v877_v20  ;;  %v882_v24 = vrot.slane %v864_v21, 7  ;;  %v879_v45 = vrot.slane %v862_v37, 7  ;;  %v866_v46 = vmax.f32 %v4723_v38, 0.0 }
 0x117   : > { %v5877_v26 = vsel %vm875_vm2, %v876_v18, %v880_v22  ;;  %908 = vst [vmem:[#allocation3 + $0x40] sm:$0x1] %v880_v22  ;;  %902 = vst [vmem:[#allocation3 + $0x10] sm:$0xfe] %v878_v40  ;;  %v884_v50 = vrot.slane %v865_v41, 7 }
 0x118   : > { %904 = vst [vmem:[#allocation3 + $0x20] sm:$0xff] %v5877_v26  ;;  %v5881_v27 = vsel %vm875_vm2, %v877_v20, %v882_v24  ;;  %909 = vst [vmem:[#allocation3 + $0x48] sm:$0x1] %v882_v24  ;;  %v886_v51 = vrot.slane %v866_v46, 7  ;;  %v4995_v16 = vld [vmem:[%s6893_s3 + $0x28c] ss:$16 sps:$4 sm:$0xff]  }
 0x119   : > { %903 = vst [vmem:[#allocation3 + $0x18] sm:$0xfe] %v879_v45  ;;  %v5898_v52 = vsel %vm875_vm2, %v878_v40, %v884_v50  ;;  %910 = vst [vmem:[#allocation3 + $0x50] sm:$0x1] %v884_v50  ;;  %v4990_v25 = vld [vmem:[%s6893_s3 + $0x280] ss:$16 sps:$4 sm:$0xff]  }
 0x11a   : > { %906 = vst [vmem:[#allocation3 + $0x30] sm:$0xff] %v5898_v52  ;;  %v887_v55 = vsel %vm875_vm2, %v879_v45, %v886_v51  ;;  %911 = vst [vmem:[#allocation3 + $0x58] sm:$0x1] %v886_v51  ;;  %v4998_v33 = vld [vmem:[%s6893_s3 + $0x2a4] ss:$16 sps:$4 sm:$0xff]  }
 0x11b   : > { %v5001_v34 = vld [vmem:[%s6893_s3 + $0x2ac] ss:$16 sps:$4 sm:$0xff]   ;;  %v4999_v40 = vld [vmem:[%s6893_s3 + $0x2a8] ss:$16 sps:$4 sm:$0xff]   ;;  %v5002_v45 = vld [vmem:[%s6893_s3 + $0x2c0] ss:$16 sps:$4 sm:$0xff]  }
 0x11c   : > { %v934_v36 = vld [vmem:[#allocation3] sm:$0xff]  ;;  %v5016_v51 = vld [vmem:[%s6893_s3 + $0x304] ss:$16 sps:$4 sm:$0xff]  }
 0x11d   : > { %v935_v39 = vld [vmem:[#allocation3 + $0x8] sm:$0xff]  ;;  %v942_v47 = vpack.c.bf16 %v5877_v26, %v934_v36  ;;  %v5005_v46 = vld [vmem:[%s6893_s3 + $0x2c8] ss:$16 sps:$4 sm:$0xff]  }
 0x11e   : > { %v943_v42 = vpack.c.bf16 %v5881_v27, %v935_v39  ;;  %v2918_v8 = vld [vmem:[#allocation3 + $0x10] sm:$0xfc]  ;;  %v4996_v39 = vld [vmem:[%s6893_s3 + $0x2a0] ss:$16 sps:$4 sm:$0xff]  }
 0x11f   : > { %v5011_v50 = vld [vmem:[%s6893_s3 + $0x2e8] ss:$16 sps:$4 sm:$0xff]  }
 0x120   : > { %1746 = vmatprep.mubr.bf16.mxu0 %v943_v42  ;;  %1832 = vmatprep.mubr.bf16.mxu1 %v943_v42  ;;  %v937_v62 = vld [vmem:[#allocation3 + $0x18] sm:$0xff]  ;;  %v2922_v23 = vld [vmem:[#allocation3 + $0x50] sm:$0x3] }
 0x121   : > { %1747 = vmatmul.mubr.bf16.vlgmr.msra.gmra.mrb[4].mxu0 %v942_v47  ;;  %1833 = vmatmul.mubr.bf16.vlgmr.msra.gmra.mrb[4].mxu1 %v942_v47  ;;  %v1897_v63 = vld [vmem:[#allocation3 + $0x18] sm:$0xfe]  ;;  %v945_v4 = vpack.c.bf16 %v887_v55, %v937_v62  ;;  %v1905_v7 = vld [vmem:[#allocation3 + $0x58] sm:$0x1]  ;;  %v5938_v21 = vld [vmem:[#allocation3 + $0x30] sm:$0xff]  ;;  %v2930_v32 = vpack.c.bf16 %v2922_v23, %v2922_v23 }
 0x122   : > { %1758 = vmatpush1.bf16.msra.mxu0 %v4966_v43  ;;  %1844 = vmatpush1.bf16.msra.mxu1 %v4969_v44  ;;  %v1909_v5 = vpack.c.bf16 %v887_v55, %v1897_v63  ;;  %v1913_v9 = vpack.c.bf16 %v1905_v7, %v1905_v7  ;;  %v2919_v12 = vld [vmem:[#allocation3 + $0x18] sm:$0xfc]  ;;  %v2923_v13 = vld [vmem:[#allocation3 + $0x58] sm:$0x3]  ;;  %v2926_v24 = vpack.c.bf16 %v5938_v21, %v2918_v8  ;;  %v5007_v43 = vld [vmem:[%s6893_s3 + $0x2cc] ss:$16 sps:$4 sm:$0xff]  }
 0x123   : > { %1759 = vmatprep.subr.bf16.mxu0 %v4974_v48  ;;  %1845 = vmatprep.subr.bf16.mxu1 %v4977_v49  ;;  %v2927_v18 = vpack.c.bf16 %v887_v55, %v2919_v12  ;;  %v2931_v22 = vpack.c.bf16 %v2923_v13, %v2923_v13  ;;  %v3077_v38 = vrot.slane %v2930_v32, 1  ;;  %v5004_v42 = vld [vmem:[%s6893_s3 + $0x2c4] ss:$16 sps:$4 sm:$0xff]   ;;  %v5013_v48 = vld [vmem:[%s6893_s3 + $0x2ec] ss:$16 sps:$4 sm:$0xff]  }
 0x124   : > { %v2081_v10 = vshrl.u32 %v1909_v5, 16  ;;  %v2083_v11 = vshll.u32 %v1909_v5, 16  ;;  %1789 = vmatprep.mubr.bf16.mxu0 %v945_v4  ;;  %1875 = vmatprep.mubr.bf16.mxu1 %v945_v4  ;;  %v2088_v20 = vshll.u32 %v1913_v9, 16  ;;  %v3076_v37 = vrot.slane %v2926_v24, 1  ;;  %v5010_v47 = vld [vmem:[%s6893_s3 + $0x2e4] ss:$16 sps:$4 sm:$0xff]  }
 0x125   : > { %v3079_v31 = vrot.slane %v2927_v18, 1  ;;  %v3080_v36 = vrot.slane %v2931_v22, 1  ;;  %v5008_v49 = vld [vmem:[%s6893_s3 + $0x2e0] ss:$16 sps:$4 sm:$0xff]   ;;  %v5017_v55 = vld [vmem:[%s6893_s3 + $0x308] ss:$16 sps:$4 sm:$0xff]  }
 0x126   : > { %1760 = vmatpush1.bf16.msra.mxu0 %v4972_v53  ;;  %1846 = vmatpush1.bf16.msra.mxu1 %v4975_v54  ;;  %v2085_v19 = vrot.slane %v2083_v11, 1  ;;  %v2090_v30 = vrot.slane %v2088_v20, 1  ;;  %v5972_v44 = vsel %vm3069_vm4, %v3076_v37, %v3077_v38  ;;  %v5019_v53 = vld [vmem:[%s6893_s3 + $0x30c] ss:$16 sps:$4 sm:$0xff]   ;;  %v5014_v54 = vld [vmem:[%s6893_s3 + $0x300] ss:$16 sps:$4 sm:$0xff]  }
 0x127   : > { %1761 = vmatprep.subr.bf16.mxu0 %v4980_v56  ;;  %1847 = vmatprep.subr.bf16.mxu1 %v4983_v57  ;;  %v5963_v41 = vsel %vm3069_vm4, %v3079_v31, %v3080_v36  ;;  %v5022_v56 = vld [vmem:[%s6893_s3 + $0x324] ss:$16 sps:$4 sm:$0xff]   ;;  %v5025_v57 = vld [vmem:[%s6893_s3 + $0x32c] ss:$16 sps:$4 sm:$0xff]   ;;  %v5026_v62 = vld [vmem:[%s6893_s3 + $0x340] ss:$16 sps:$4 sm:$0xff]  }
 0x128   : > { %v2086_v29 = vor.u32 %v2085_v19, %v2081_v10  ;;  %v5029_v63 = vld [vmem:[%s6893_s3 + $0x348] ss:$16 sps:$4 sm:$0xff]   ;;  %v5037_v4 = vld [vmem:[%s6893_s3 + $0x36c] ss:$16 sps:$4 sm:$0xff]   ;;  %v5032_v5 = vld [vmem:[%s6893_s3 + $0x360] ss:$16 sps:$4 sm:$0xff]  }
 0x129   : > { %v5040_v7 = vld [vmem:[%s6893_s3 + $0x384] ss:$16 sps:$4 sm:$0xff]   ;;  %v5043_v8 = vld [vmem:[%s6893_s3 + $0x38c] ss:$16 sps:$4 sm:$0xff]   ;;  %v5038_v9 = vld [vmem:[%s6893_s3 + $0x380] ss:$16 sps:$4 sm:$0xff]  }
 0x12a   : > { %1762 = vmatpush1.bf16.msra.mxu0 %v4978_v58  ;;  %1848 = vmatpush1.bf16.msra.mxu1 %v4981_v59  ;;  %v5954_v35 = vsel %vm2043_vm3, %v2086_v29, %v2090_v30  ;;  %v5020_v58 = vld [vmem:[%s6893_s3 + $0x320] ss:$16 sps:$4 sm:$0xff]   ;;  %v5023_v59 = vld [vmem:[%s6893_s3 + $0x328] ss:$16 sps:$4 sm:$0xff]   ;;  %v5046_v12 = vld [vmem:[%s6893_s3 + $0x3a4] ss:$16 sps:$4 sm:$0xff]  }
 0x12b   : > { %1763 = vmatprep.subr.bf16.mxu0 %v4986_v60  ;;  %1849 = vmatprep.subr.bf16.mxu1 %v4989_v61  ;;  %v5028_v60 = vld [vmem:[%s6893_s3 + $0x344] ss:$16 sps:$4 sm:$0xff]   ;;  %v5031_v61 = vld [vmem:[%s6893_s3 + $0x34c] ss:$16 sps:$4 sm:$0xff]   ;;  %v5041_v10 = vld [vmem:[%s6893_s3 + $0x388] ss:$16 sps:$4 sm:$0xff]  }
 0x12c   : > { %v1895_v11 = vld [vmem:[#allocation3 + $0x8] sm:$0xfe]  ;;  %v5049_v13 = vld [vmem:[%s6893_s3 + $0x3ac] ss:$16 sps:$4 sm:$0xff]   ;;  %v5047_v18 = vld [vmem:[%s6893_s3 + $0x3a8] ss:$16 sps:$4 sm:$0xff]  }
 0x12d   : > { %v1903_v19 = vld [vmem:[#allocation3 + $0x48] sm:$0x1]  ;;  %v5052_v20 = vld [vmem:[%s6893_s3 + $0x3c4] ss:$16 sps:$4 sm:$0xff]   ;;  %v5055_v22 = vld [vmem:[%s6893_s3 + $0x3cc] ss:$16 sps:$4 sm:$0xff]  }
 0x12e   : > { %1764 = vmatpush1.bf16.msra.mxu0 %v4984_v2  ;;  %1850 = vmatpush1.bf16.msra.mxu1 %v4987_v6  ;;  %v5034_v2 = vld [vmem:[%s6893_s3 + $0x364] ss:$16 sps:$4 sm:$0xff]   ;;  %v5035_v6 = vld [vmem:[%s6893_s3 + $0x368] ss:$16 sps:$4 sm:$0xff]   ;;  %v1911_v23 = vpack.c.bf16 %v1903_v19, %v1903_v19  ;;  %v5061_v30 = vld [vmem:[%s6893_s3 + $0x3ec] ss:$16 sps:$4 sm:$0xff]  }
 0x12f   : > { %1765 = vmatprep.subr.bf16.mxu0 %v4992_v15  ;;  %1851 = vmatprep.subr.bf16.mxu1 %v4995_v16  ;;  %v1907_v15 = vpack.c.bf16 %v5881_v27, %v1895_v11  ;;  %v5044_v16 = vld [vmem:[%s6893_s3 + $0x3a0] ss:$16 sps:$4 sm:$0xff]   ;;  %v5058_v29 = vld [vmem:[%s6893_s3 + $0x3e4] ss:$16 sps:$4 sm:$0xff]   ;;  %v5067_v37 = vld [vmem:[%s6893_s3 + $0x40c] ss:$16 sps:$4 sm:$0xff]  }
 0x130   : > { %v2064_v32 = vshll.u32 %v1911_v23, 16  ;;  %v5064_v36 = vld [vmem:[%s6893_s3 + $0x404] ss:$16 sps:$4 sm:$0xff]   ;;  %v5110_v19 = vld [vmem:[%s6893_s3 + $0x500] ss:$16 sps:$4 sm:$0xff]  }
 0x131   : > { %v2059_v24 = vshll.u32 %v1907_v15, 16  ;;  %v2057_v38 = vshrl.u32 %v1907_v15, 16  ;;  %v5106_v11 = vld [vmem:[%s6893_s3 + $0x4e4] ss:$16 sps:$4 sm:$0xff]   ;;  %v5107_v15 = vld [vmem:[%s6893_s3 + $0x4e8] ss:$16 sps:$4 sm:$0xff]  }
 0x132   : > { %1766 = vmatpush1.bf16.msra.mxu0 %v4990_v25  ;;  %1852 = vmatpush1.bf16.msra.mxu1 %v4993_v28  ;;  %v5050_v25 = vld [vmem:[%s6893_s3 + $0x3c0] ss:$16 sps:$4 sm:$0xff]   ;;  %v5053_v28 = vld [vmem:[%s6893_s3 + $0x3c8] ss:$16 sps:$4 sm:$0xff]   ;;  %v5121_v23 = vld [vmem:[%s6893_s3 + $0x52c] ss:$16 sps:$4 sm:$0xff]  }
 0x133   : > { %1767 = vmatprep.subr.bf16.mxu0 %v4998_v33  ;;  %1853 = vmatprep.subr.bf16.mxu1 %v5001_v34  ;;  %v2061_v31 = vrot.slane %v2059_v24, 1  ;;  %v5056_v33 = vld [vmem:[%s6893_s3 + $0x3e0] ss:$16 sps:$4 sm:$0xff]   ;;  %v5059_v34 = vld [vmem:[%s6893_s3 + $0x3e8] ss:$16 sps:$4 sm:$0xff]  }
 0x134   : > { %v5116_v24 = vld [vmem:[%s6893_s3 + $0x520] ss:$16 sps:$4 sm:$0xff]  }
 0x136   : > { %1768 = vmatpush1.bf16.msra.mxu0 %v4996_v39  ;;  %1854 = vmatpush1.bf16.msra.mxu1 %v4999_v40  ;;  %v936_v39 = vld [vmem:[#allocation3 + $0x10] sm:$0xff]  ;;  %v2062_v40 = vor.u32 %v2061_v31, %v2057_v38 }
 0x137   : > { %1769 = vmatprep.subr.bf16.mxu0 %v5004_v42  ;;  %1855 = vmatprep.subr.bf16.mxu1 %v5007_v43  ;;  %v2066_v42 = vrot.slane %v2064_v32, 1  ;;  %v5062_v43 = vld [vmem:[%s6893_s3 + $0x400] ss:$16 sps:$4 sm:$0xff]   ;;  %v5125_v31 = vld [vmem:[%s6893_s3 + $0x548] ss:$16 sps:$4 sm:$0xff]  }
 0x138   : > { %v5130_v32 = vld [vmem:[%s6893_s3 + $0x564] ss:$16 sps:$4 sm:$0xff]   ;;  %v5139_v38 = vld [vmem:[%s6893_s3 + $0x58c] ss:$16 sps:$4 sm:$0xff]  }
 0x13a   : > { %1770 = vmatpush1.bf16.msra.mxu0 %v5002_v45  ;;  %1856 = vmatpush1.bf16.msra.mxu1 %v5005_v46  ;;  %v944_v45 = vpack.c.bf16 %v5898_v52, %v936_v39  ;;  %v5065_v46 = vld [vmem:[%s6893_s3 + $0x408] ss:$16 sps:$4 sm:$0xff]   ;;  %v5068_v52 = vld [vmem:[%s6893_s3 + $0x420] ss:$16 sps:$4 sm:$0xff]  }
 0x13b   : > { %1771 = vmatprep.subr.bf16.mxu0 %v5010_v47  ;;  %1857 = vmatprep.subr.bf16.mxu1 %v5013_v48  ;;  %v5070_v47 = vld [vmem:[%s6893_s3 + $0x424] ss:$16 sps:$4 sm:$0xff]   ;;  %v5073_v48 = vld [vmem:[%s6893_s3 + $0x42c] ss:$16 sps:$4 sm:$0xff]  }
 0x13c   : > { %v1894_v39 = vld [vmem:[#allocation3] sm:$0xfe] }
 0x13e   : > { %1772 = vmatpush1.bf16.msra.mxu0 %v5008_v49  ;;  %1858 = vmatpush1.bf16.msra.mxu1 %v5011_v50  ;;  %v2067_v49 = vsel %vm2043_vm3, %v2062_v40, %v2066_v42  ;;  %v5071_v50 = vld [vmem:[%s6893_s3 + $0x428] ss:$16 sps:$4 sm:$0xff]   ;;  %v5134_v40 = vld [vmem:[%s6893_s3 + $0x580] ss:$16 sps:$4 sm:$0xff]  }
 0x13f   : > { %1773 = vmatprep.subr.bf16.mxu0 %v5016_v51  ;;  %1859 = vmatprep.subr.bf16.mxu1 %v5019_v53  ;;  %v5076_v51 = vld [vmem:[%s6893_s3 + $0x444] ss:$16 sps:$4 sm:$0xff]   ;;  %v5079_v53 = vld [vmem:[%s6893_s3 + $0x44c] ss:$16 sps:$4 sm:$0xff]   ;;  %v5137_v42 = vld [vmem:[%s6893_s3 + $0x588] ss:$16 sps:$4 sm:$0xff]  }
 0x142   : > { %1774 = vmatpush1.bf16.msra.mxu0 %v5014_v54  ;;  %1860 = vmatpush1.bf16.msra.mxu1 %v5017_v55  ;;  %v5074_v54 = vld [vmem:[%s6893_s3 + $0x440] ss:$16 sps:$4 sm:$0xff]   ;;  %v5077_v55 = vld [vmem:[%s6893_s3 + $0x448] ss:$16 sps:$4 sm:$0xff]  }
 0x143   : > { %1775 = vmatprep.subr.bf16.mxu0 %v5022_v56  ;;  %1861 = vmatprep.subr.bf16.mxu1 %v5025_v57  ;;  %v5082_v56 = vld [vmem:[%s6893_s3 + $0x464] ss:$16 sps:$4 sm:$0xff]   ;;  %v5085_v57 = vld [vmem:[%s6893_s3 + $0x46c] ss:$16 sps:$4 sm:$0xff]  }
 0x146   : > { %1776 = vmatpush1.bf16.msra.mxu0 %v5020_v58  ;;  %1862 = vmatpush1.bf16.msra.mxu1 %v5023_v59  ;;  %v5080_v58 = vld [vmem:[%s6893_s3 + $0x460] ss:$16 sps:$4 sm:$0xff]   ;;  %v5083_v59 = vld [vmem:[%s6893_s3 + $0x468] ss:$16 sps:$4 sm:$0xff]  }
 0x147   : > { %1777 = vmatprep.subr.bf16.mxu0 %v5028_v60  ;;  %1863 = vmatprep.subr.bf16.mxu1 %v5031_v61  ;;  %v5088_v60 = vld [vmem:[%s6893_s3 + $0x484] ss:$16 sps:$4 sm:$0xff]   ;;  %v5091_v61 = vld [vmem:[%s6893_s3 + $0x48c] ss:$16 sps:$4 sm:$0xff]  }
 0x14a   : > { %1778 = vmatpush1.bf16.msra.mxu0 %v5026_v62  ;;  %1864 = vmatpush1.bf16.msra.mxu1 %v5029_v63  ;;  %v5086_v62 = vld [vmem:[%s6893_s3 + $0x480] ss:$16 sps:$4 sm:$0xff]   ;;  %v5089_v63 = vld [vmem:[%s6893_s3 + $0x488] ss:$16 sps:$4 sm:$0xff]  }
 0x14b   : > { %1779 = vmatprep.subr.bf16.mxu0 %v5034_v2  ;;  %1865 = vmatprep.subr.bf16.mxu1 %v5037_v4  ;;  %v5094_v2 = vld [vmem:[%s6893_s3 + $0x4a4] ss:$16 sps:$4 sm:$0xff]   ;;  %v5097_v4 = vld [vmem:[%s6893_s3 + $0x4ac] ss:$16 sps:$4 sm:$0xff]  }
 0x14e   : > { %1780 = vmatpush1.bf16.msra.mxu0 %v5032_v5  ;;  %1866 = vmatpush1.bf16.msra.mxu1 %v5035_v6  ;;  %v5092_v5 = vld [vmem:[%s6893_s3 + $0x4a0] ss:$16 sps:$4 sm:$0xff]   ;;  %v5095_v6 = vld [vmem:[%s6893_s3 + $0x4a8] ss:$16 sps:$4 sm:$0xff]  }
 0x14f   : > { %1781 = vmatprep.subr.bf16.mxu0 %v5040_v7  ;;  %1867 = vmatprep.subr.bf16.mxu1 %v5043_v8  ;;  %v5100_v7 = vld [vmem:[%s6893_s3 + $0x4c4] ss:$16 sps:$4 sm:$0xff]   ;;  %v5103_v8 = vld [vmem:[%s6893_s3 + $0x4cc] ss:$16 sps:$4 sm:$0xff]  }
 0x152   : > { %1782 = vmatpush1.bf16.msra.mxu0 %v5038_v9  ;;  %1868 = vmatpush1.bf16.msra.mxu1 %v5041_v10  ;;  %v5098_v9 = vld [vmem:[%s6893_s3 + $0x4c0] ss:$16 sps:$4 sm:$0xff]   ;;  %v5101_v10 = vld [vmem:[%s6893_s3 + $0x4c8] ss:$16 sps:$4 sm:$0xff]  }
 0x153   : > { %1783 = vmatprep.subr.bf16.mxu0 %v5046_v12  ;;  %1869 = vmatprep.subr.bf16.mxu1 %v5049_v13  ;;  %v5109_v12 = vld [vmem:[%s6893_s3 + $0x4ec] ss:$16 sps:$4 sm:$0xff]   ;;  %v5104_v13 = vld [vmem:[%s6893_s3 + $0x4e0] ss:$16 sps:$4 sm:$0xff]  }
 0x156   : > { %1784 = vmatpush1.bf16.msra.mxu0 %v5044_v16  ;;  %1870 = vmatpush1.bf16.msra.mxu1 %v5047_v18  ;;  %v5112_v16 = vld [vmem:[%s6893_s3 + $0x504] ss:$16 sps:$4 sm:$0xff]   ;;  %v5115_v18 = vld [vmem:[%s6893_s3 + $0x50c] ss:$16 sps:$4 sm:$0xff]  }
 0x157   : > { %1785 = vmatprep.subr.bf16.mxu0 %v5052_v20  ;;  %1871 = vmatprep.subr.bf16.mxu1 %v5055_v22  ;;  %v5113_v20 = vld [vmem:[%s6893_s3 + $0x508] ss:$16 sps:$4 sm:$0xff]   ;;  %v5118_v22 = vld [vmem:[%s6893_s3 + $0x524] ss:$16 sps:$4 sm:$0xff]  }
 0x15a   : > { %1786 = vmatpush1.bf16.msra.mxu0 %v5050_v25  ;;  %1872 = vmatpush1.bf16.msra.mxu1 %v5053_v28  ;;  %v5119_v25 = vld [vmem:[%s6893_s3 + $0x528] ss:$16 sps:$4 sm:$0xff]   ;;  %v5124_v28 = vld [vmem:[%s6893_s3 + $0x544] ss:$16 sps:$4 sm:$0xff]  }
 0x15b   : > { %1787 = vmatprep.subr.bf16.mxu0 %v5058_v29  ;;  %1873 = vmatprep.subr.bf16.mxu1 %v5061_v30  ;;  %v5127_v29 = vld [vmem:[%s6893_s3 + $0x54c] ss:$16 sps:$4 sm:$0xff]   ;;  %v5122_v30 = vld [vmem:[%s6893_s3 + $0x540] ss:$16 sps:$4 sm:$0xff]  }
 0x15e   : > { %1788 = vmatpush1.bf16.msra.mxu0 %v5056_v33  ;;  %1874 = vmatpush1.bf16.msra.mxu1 %v5059_v34  ;;  %v5133_v33 = vld [vmem:[%s6893_s3 + $0x56c] ss:$16 sps:$4 sm:$0xff]   ;;  %v5128_v34 = vld [vmem:[%s6893_s3 + $0x560] ss:$16 sps:$4 sm:$0xff]  }
 0x15f   : > { %2736 = vmatprep.subr.bf16.mxu0 %v5064_v36  ;;  %2822 = vmatprep.subr.bf16.mxu1 %v5067_v37  ;;  %v5131_v36 = vld [vmem:[%s6893_s3 + $0x568] ss:$16 sps:$4 sm:$0xff]   ;;  %v5136_v37 = vld [vmem:[%s6893_s3 + $0x584] ss:$16 sps:$4 sm:$0xff]  }
 0x161   : > { %1790 = vmatmul.mubr.bf16.vlgmr.msra.gmra.mrb[4].mxu0 %v944_v45  ;;  %1876 = vmatmul.mubr.bf16.vlgmr.msra.gmra.mrb[4].mxu1 %v944_v45  ;;  %v5145_v45 = vld [vmem:[%s6893_s3 + $0x5ac] ss:$16 sps:$4 sm:$0xff]  }
 0x162   : > { %2737 = vmatpush1.bf16.msra.mxu0 %v5062_v43  ;;  %2768 = vmatprep.mubr.bf16.mxu0 %v2067_v49  ;;  %v5142_v43 = vld [vmem:[%s6893_s3 + $0x5a4] ss:$16 sps:$4 sm:$0xff]  }
 0x163   : > { %2823 = vmatpush1.bf16.msra.mxu1 %v5065_v46  ;;  %2854 = vmatprep.mubr.bf16.mxu1 %v2067_v49  ;;  %v1906_v46 = vpack.c.bf16 %v5877_v26, %v1894_v39  ;;  %v5143_v49 = vld [vmem:[%s6893_s3 + $0x5a8] ss:$16 sps:$4 sm:$0xff]   ;;  %v5151_v26 = vld [vmem:[%s6893_s3 + $0x5cc] ss:$16 sps:$4 sm:$0xff]   ;;  %v5200_v39 = vld [vmem:[%s6893_s3 + $0x6e0] ss:$16 sps:$4 sm:$0xff]  }
 0x164   : > { %2738 = vmatprep.subr.bf16.mxu0 %v5070_v47  ;;  %2824 = vmatprep.subr.bf16.mxu1 %v5073_v48  ;;  %v1902_v47 = vld [vmem:[#allocation3 + $0x40] sm:$0x1]  ;;  %v5140_v48 = vld [vmem:[%s6893_s3 + $0x5a0] ss:$16 sps:$4 sm:$0xff]  }
 0x166   : > { %2739 = vmatpush1.bf16.msra.mxu0 %v5068_v52  ;;  %v5148_v52 = vld [vmem:[%s6893_s3 + $0x5c4] ss:$16 sps:$4 sm:$0xff]  }
 0x167   : > { %2825 = vmatpush1.bf16.msra.mxu1 %v5071_v50  ;;  %2740 = vmatprep.subr.bf16.mxu0 %v5076_v51  ;;  %v1910_v50 = vpack.c.bf16 %v1902_v47, %v1902_v47  ;;  %v2047_v51 = vshll.u32 %v1906_v46, 16  ;;  %v5214_v47 = vld [vmem:[%s6893_s3 + $0x724] ss:$16 sps:$4 sm:$0xff]  }
 0x168   : > { %2826 = vmatprep.subr.bf16.mxu1 %v5079_v53  ;;  %v5146_v53 = vld [vmem:[%s6893_s3 + $0x5c0] ss:$16 sps:$4 sm:$0xff]  }
 0x16a   : > { %2741 = vmatpush1.bf16.msra.mxu0 %v5074_v54  ;;  %v5149_v54 = vld [vmem:[%s6893_s3 + $0x5c8] ss:$16 sps:$4 sm:$0xff]  }
 0x16b   : > { %2827 = vmatpush1.bf16.msra.mxu1 %v5077_v55  ;;  %2742 = vmatprep.subr.bf16.mxu0 %v5082_v56  ;;  %v5154_v55 = vld [vmem:[%s6893_s3 + $0x5e4] ss:$16 sps:$4 sm:$0xff]   ;;  %v5157_v56 = vld [vmem:[%s6893_s3 + $0x5ec] ss:$16 sps:$4 sm:$0xff]  }
 0x16c   : > { %2828 = vmatprep.subr.bf16.mxu1 %v5085_v57  ;;  %v2049_v57 = vrot.slane %v2047_v51, 1  ;;  %v5218_v51 = vld [vmem:[%s6893_s3 + $0x740] ss:$16 sps:$4 sm:$0xff]  }
 0x16e   : > { %2743 = vmatpush1.bf16.msra.mxu0 %v5080_v58  ;;  %v2052_v58 = vshll.u32 %v1910_v50, 16  ;;  %v5223_v50 = vld [vmem:[%s6893_s3 + $0x74c] ss:$16 sps:$4 sm:$0xff]  }
 0x16f   : > { %2829 = vmatpush1.bf16.msra.mxu1 %v5083_v59  ;;  %2744 = vmatprep.subr.bf16.mxu0 %v5088_v60  ;;  %v5152_v59 = vld [vmem:[%s6893_s3 + $0x5e0] ss:$16 sps:$4 sm:$0xff]   ;;  %v2045_v60 = vshrl.u32 %v1906_v46, 16  ;;  %v5209_v46 = vld [vmem:[%s6893_s3 + $0x708] ss:$16 sps:$4 sm:$0xff]  }
 0x170   : > { %2830 = vmatprep.subr.bf16.mxu1 %v5091_v61  ;;  %v5155_v61 = vld [vmem:[%s6893_s3 + $0x5e8] ss:$16 sps:$4 sm:$0xff]  }
 0x172   : > { %2745 = vmatpush1.bf16.msra.mxu0 %v5086_v62  ;;  %v5160_v62 = vld [vmem:[%s6893_s3 + $0x604] ss:$16 sps:$4 sm:$0xff]  }
 0x173   : > { %2831 = vmatpush1.bf16.msra.mxu1 %v5089_v63  ;;  %2746 = vmatprep.subr.bf16.mxu0 %v5094_v2  ;;  %v2050_v63 = vor.u32 %v2049_v57, %v2045_v60  ;;  %v2054_v2 = vrot.slane %v2052_v58, 1  ;;  %v5227_v57 = vld [vmem:[%s6893_s3 + $0x768] ss:$16 sps:$4 sm:$0xff]   ;;  %v5232_v58 = vld [vmem:[%s6893_s3 + $0x784] ss:$16 sps:$4 sm:$0xff]  }
 0x174   : > { %2832 = vmatprep.subr.bf16.mxu1 %v5097_v4  ;;  %v5163_v4 = vld [vmem:[%s6893_s3 + $0x60c] ss:$16 sps:$4 sm:$0xff]  }
 0x175   : > { %v1896_v60 = vld [vmem:[#allocation3 + $0x10] sm:$0xfe] }
 0x176   : > { %2747 = vmatpush1.bf16.msra.mxu0 %v5092_v5  ;;  %v5158_v5 = vld [vmem:[%s6893_s3 + $0x600] ss:$16 sps:$4 sm:$0xff]  }
 0x177   : > { %2833 = vmatpush1.bf16.msra.mxu1 %v5095_v6  ;;  %2748 = vmatprep.subr.bf16.mxu0 %v5100_v7  ;;  %v5161_v6 = vld [vmem:[%s6893_s3 + $0x608] ss:$16 sps:$4 sm:$0xff]   ;;  %v2055_v7 = vsel %vm2043_vm3, %v2050_v63, %v2054_v2  ;;  %v5238_v63 = vld [vmem:[%s6893_s3 + $0x7a4] ss:$16 sps:$4 sm:$0xff]   ;;  %v5241_v2 = vld [vmem:[%s6893_s3 + $0x7ac] ss:$16 sps:$4 sm:$0xff]  }
 0x178   : > { %2834 = vmatprep.subr.bf16.mxu1 %v5103_v8  ;;  %v5166_v8 = vld [vmem:[%s6893_s3 + $0x624] ss:$16 sps:$4 sm:$0xff]  }
 0x17a   : > { %2749 = vmatpush1.bf16.msra.mxu0 %v5098_v9  ;;  %v5169_v9 = vld [vmem:[%s6893_s3 + $0x62c] ss:$16 sps:$4 sm:$0xff]  }
 0x17b   : > { %2835 = vmatpush1.bf16.msra.mxu1 %v5101_v10  ;;  %2750 = vmatprep.subr.bf16.mxu0 %v5106_v11  ;;  %v5164_v10 = vld [vmem:[%s6893_s3 + $0x620] ss:$16 sps:$4 sm:$0xff]   ;;  %v5167_v11 = vld [vmem:[%s6893_s3 + $0x628] ss:$16 sps:$4 sm:$0xff]  }
 0x17c   : > { %2836 = vmatprep.subr.bf16.mxu1 %v5109_v12  ;;  %v5172_v12 = vld [vmem:[%s6893_s3 + $0x644] ss:$16 sps:$4 sm:$0xff]  }
 0x17e   : > { %2751 = vmatpush1.bf16.msra.mxu0 %v5104_v13  ;;  %v5175_v13 = vld [vmem:[%s6893_s3 + $0x64c] ss:$16 sps:$4 sm:$0xff]  }
 0x17f   : > { %2837 = vmatpush1.bf16.msra.mxu1 %v5107_v15  ;;  %2752 = vmatprep.subr.bf16.mxu0 %v5112_v16  ;;  %v5170_v15 = vld [vmem:[%s6893_s3 + $0x640] ss:$16 sps:$4 sm:$0xff]   ;;  %v5173_v16 = vld [vmem:[%s6893_s3 + $0x648] ss:$16 sps:$4 sm:$0xff]  }
 0x180   : > { %2838 = vmatprep.subr.bf16.mxu1 %v5115_v18  ;;  %v5181_v18 = vld [vmem:[%s6893_s3 + $0x66c] ss:$16 sps:$4 sm:$0xff]  }
 0x182   : > { %2753 = vmatpush1.bf16.msra.mxu0 %v5110_v19  ;;  %v5176_v19 = vld [vmem:[%s6893_s3 + $0x660] ss:$16 sps:$4 sm:$0xff]  }
 0x183   : > { %2839 = vmatpush1.bf16.msra.mxu1 %v5113_v20  ;;  %2754 = vmatprep.subr.bf16.mxu0 %v5118_v22  ;;  %v5179_v20 = vld [vmem:[%s6893_s3 + $0x668] ss:$16 sps:$4 sm:$0xff]   ;;  %v5184_v22 = vld [vmem:[%s6893_s3 + $0x684] ss:$16 sps:$4 sm:$0xff]  }
 0x184   : > { %2840 = vmatprep.subr.bf16.mxu1 %v5121_v23  ;;  %v5187_v23 = vld [vmem:[%s6893_s3 + $0x68c] ss:$16 sps:$4 sm:$0xff]  }
 0x186   : > { %2755 = vmatpush1.bf16.msra.mxu0 %v5116_v24  ;;  %v5182_v24 = vld [vmem:[%s6893_s3 + $0x680] ss:$16 sps:$4 sm:$0xff]  }
 0x187   : > { %2841 = vmatpush1.bf16.msra.mxu1 %v5119_v25  ;;  %2756 = vmatprep.subr.bf16.mxu0 %v5124_v28  ;;  %v5185_v25 = vld [vmem:[%s6893_s3 + $0x688] ss:$16 sps:$4 sm:$0xff]   ;;  %v5190_v28 = vld [vmem:[%s6893_s3 + $0x6a4] ss:$16 sps:$4 sm:$0xff]  }
 0x188   : > { %2842 = vmatprep.subr.bf16.mxu1 %v5127_v29  ;;  %v5193_v29 = vld [vmem:[%s6893_s3 + $0x6ac] ss:$16 sps:$4 sm:$0xff]  }
 0x18a   : > { %2757 = vmatpush1.bf16.msra.mxu0 %v5122_v30  ;;  %v5188_v30 = vld [vmem:[%s6893_s3 + $0x6a0] ss:$16 sps:$4 sm:$0xff]  }
 0x18b   : > { %2843 = vmatpush1.bf16.msra.mxu1 %v5125_v31  ;;  %2758 = vmatprep.subr.bf16.mxu0 %v5130_v32  ;;  %v5191_v31 = vld [vmem:[%s6893_s3 + $0x6a8] ss:$16 sps:$4 sm:$0xff]   ;;  %v5196_v32 = vld [vmem:[%s6893_s3 + $0x6c4] ss:$16 sps:$4 sm:$0xff]  }
 0x18c   : > { %2844 = vmatprep.subr.bf16.mxu1 %v5133_v33  ;;  %v5199_v33 = vld [vmem:[%s6893_s3 + $0x6cc] ss:$16 sps:$4 sm:$0xff]  }
 0x18e   : > { %2759 = vmatpush1.bf16.msra.mxu0 %v5128_v34  ;;  %v5194_v34 = vld [vmem:[%s6893_s3 + $0x6c0] ss:$16 sps:$4 sm:$0xff]  }
 0x18f   : > { %2845 = vmatpush1.bf16.msra.mxu1 %v5131_v36  ;;  %2760 = vmatprep.subr.bf16.mxu0 %v5136_v37  ;;  %v5197_v36 = vld [vmem:[%s6893_s3 + $0x6c8] ss:$16 sps:$4 sm:$0xff]   ;;  %v5202_v37 = vld [vmem:[%s6893_s3 + $0x6e4] ss:$16 sps:$4 sm:$0xff]  }
 0x190   : > { %2846 = vmatprep.subr.bf16.mxu1 %v5139_v38  ;;  %v5205_v38 = vld [vmem:[%s6893_s3 + $0x6ec] ss:$16 sps:$4 sm:$0xff]  }
 0x192   : > { %2761 = vmatpush1.bf16.msra.mxu0 %v5134_v40  ;;  %v5203_v40 = vld [vmem:[%s6893_s3 + $0x6e8] ss:$16 sps:$4 sm:$0xff]  }
 0x193   : > { %2847 = vmatpush1.bf16.msra.mxu1 %v5137_v42  ;;  %2762 = vmatprep.subr.bf16.mxu0 %v5142_v43  ;;  %v5208_v42 = vld [vmem:[%s6893_s3 + $0x704] ss:$16 sps:$4 sm:$0xff]   ;;  %v5211_v43 = vld [vmem:[%s6893_s3 + $0x70c] ss:$16 sps:$4 sm:$0xff]  }
 0x194   : > { %2848 = vmatprep.subr.bf16.mxu1 %v5145_v45  ;;  %v5206_v45 = vld [vmem:[%s6893_s3 + $0x700] ss:$16 sps:$4 sm:$0xff]  }
 0x196   : > { %2763 = vmatpush1.bf16.msra.mxu0 %v5140_v48  ;;  %v5217_v48 = vld [vmem:[%s6893_s3 + $0x72c] ss:$16 sps:$4 sm:$0xff]  }
 0x197   : > { %2849 = vmatpush1.bf16.msra.mxu1 %v5143_v49  ;;  %2764 = vmatprep.subr.bf16.mxu0 %v5148_v52  ;;  %v5212_v49 = vld [vmem:[%s6893_s3 + $0x720] ss:$16 sps:$4 sm:$0xff]   ;;  %v5215_v52 = vld [vmem:[%s6893_s3 + $0x728] ss:$16 sps:$4 sm:$0xff]  }
 0x198   : > { %2850 = vmatprep.subr.bf16.mxu1 %v5151_v26  ;;  %v5220_v26 = vld [vmem:[%s6893_s3 + $0x744] ss:$16 sps:$4 sm:$0xff]  }
 0x19a   : > { %2765 = vmatpush1.bf16.msra.mxu0 %v5146_v53  ;;  %v5221_v53 = vld [vmem:[%s6893_s3 + $0x748] ss:$16 sps:$4 sm:$0xff]  }
 0x19b   : > { %2851 = vmatpush1.bf16.msra.mxu1 %v5149_v54  ;;  %2766 = vmatprep.subr.bf16.mxu0 %v5154_v55  ;;  %v5226_v54 = vld [vmem:[%s6893_s3 + $0x764] ss:$16 sps:$4 sm:$0xff]   ;;  %v5229_v55 = vld [vmem:[%s6893_s3 + $0x76c] ss:$16 sps:$4 sm:$0xff]  }
 0x19c   : > { %2852 = vmatprep.subr.bf16.mxu1 %v5157_v56  ;;  %v5224_v56 = vld [vmem:[%s6893_s3 + $0x760] ss:$16 sps:$4 sm:$0xff]  }
 0x19e   : > { %2767 = vmatpush1.bf16.msra.mxu0 %v5152_v59  ;;  %v5235_v59 = vld [vmem:[%s6893_s3 + $0x78c] ss:$16 sps:$4 sm:$0xff]  }
 0x19f   : > { %2853 = vmatpush1.bf16.msra.mxu1 %v5155_v61  ;;  %2779 = vmatprep.subr.bf16.mxu0 %v5160_v62  ;;  %v5230_v61 = vld [vmem:[%s6893_s3 + $0x780] ss:$16 sps:$4 sm:$0xff]   ;;  %v5233_v62 = vld [vmem:[%s6893_s3 + $0x788] ss:$16 sps:$4 sm:$0xff]  }
 0x1a0   : > { %2865 = vmatprep.subr.bf16.mxu1 %v5163_v4  ;;  %v1908_v4 = vpack.c.bf16 %v5938_v21, %v1896_v60  ;;  %v5247_v21 = vld [vmem:[%s6893_s3 + $0x7cc] ss:$16 sps:$4 sm:$0xff]  }
 0x1a1   : > { %2769 = vmatmul.mubr.bf16.vlgmr.msra.gmra.mrb[4].mxu0 %v2055_v7  ;;  %v5295_v60 = vld [vmem:[%s6893_s3 + $0x8cc] ss:$16 sps:$4 sm:$0xff]  }
 0x1a2   : > { %2855 = vmatmul.mubr.bf16.vlgmr.msra.gmra.mrb[4].mxu1 %v2055_v7  ;;  %2780 = vmatpush1.bf16.msra.mxu0 %v5158_v5  ;;  %v1904_v5 = vld [vmem:[#allocation3 + $0x50] sm:$0x1] }
 0x1a3   : > { %2811 = vmatprep.mubr.bf16.mxu0 %v5954_v35  ;;  %2866 = vmatpush1.bf16.msra.mxu1 %v5161_v6  ;;  %v5236_v6 = vld [vmem:[%s6893_s3 + $0x7a0] ss:$16 sps:$4 sm:$0xff]   ;;  %v5239_v7 = vld [vmem:[%s6893_s3 + $0x7a8] ss:$16 sps:$4 sm:$0xff]  }
 0x1a4   : > { %2897 = vmatprep.mubr.bf16.mxu1 %v5954_v35  ;;  %2781 = vmatprep.subr.bf16.mxu0 %v5166_v8  ;;  %v5178_v35 = vld [vmem:[%s6893_s3 + $0x664] ss:$16 sps:$4 sm:$0xff]  }
 0x1a5   : > { %2867 = vmatprep.subr.bf16.mxu1 %v5169_v9  ;;  %v5244_v8 = vld [vmem:[%s6893_s3 + $0x7c4] ss:$16 sps:$4 sm:$0xff]   ;;  %v1912_v9 = vpack.c.bf16 %v1904_v5, %v1904_v5  ;;  %v5299_v5 = vld [vmem:[%s6893_s3 + $0x8e8] ss:$16 sps:$4 sm:$0xff]  }
 0x1a6   : > { %2782 = vmatpush1.bf16.msra.mxu0 %v5164_v10  ;;  %v2071_v10 = vshll.u32 %v1908_v4, 16 }
 0x1a7   : > { %2868 = vmatpush1.bf16.msra.mxu1 %v5167_v11  ;;  %2783 = vmatprep.subr.bf16.mxu0 %v5172_v12  ;;  %v5242_v11 = vld [vmem:[%s6893_s3 + $0x7c0] ss:$16 sps:$4 sm:$0xff]   ;;  %v5245_v12 = vld [vmem:[%s6893_s3 + $0x7c8] ss:$16 sps:$4 sm:$0xff]  }
 0x1a8   : > { %2869 = vmatprep.subr.bf16.mxu1 %v5175_v13  ;;  %v5250_v13 = vld [vmem:[%s6893_s3 + $0x7e4] ss:$16 sps:$4 sm:$0xff]  }
 0x1aa   : > { %2784 = vmatpush1.bf16.msra.mxu0 %v5170_v15  ;;  %v2921_v15 = vld [vmem:[#allocation3 + $0x48] sm:$0x3] }
 0x1ab   : > { %2870 = vmatpush1.bf16.msra.mxu1 %v5173_v16  ;;  %2785 = vmatprep.subr.bf16.mxu0 %v5178_v35  ;;  %v5253_v16 = vld [vmem:[%s6893_s3 + $0x7ec] ss:$16 sps:$4 sm:$0xff]   ;;  %v2069_v35 = vshrl.u32 %v1908_v4, 16  ;;  %v5296_v4 = vld [vmem:[%s6893_s3 + $0x8e0] ss:$16 sps:$4 sm:$0xff]  }
 0x1ac   : > { %2871 = vmatprep.subr.bf16.mxu1 %v5181_v18  ;;  %v2073_v18 = vrot.slane %v2071_v10, 1  ;;  %v5313_v10 = vld [vmem:[%s6893_s3 + $0x92c] ss:$16 sps:$4 sm:$0xff]  }
 0x1ae   : > { %2786 = vmatpush1.bf16.msra.mxu0 %v5176_v19  ;;  %v2076_v19 = vshll.u32 %v1912_v9, 16  ;;  %v5310_v9 = vld [vmem:[%s6893_s3 + $0x924] ss:$16 sps:$4 sm:$0xff]  }
 0x1af   : > { %2872 = vmatpush1.bf16.msra.mxu1 %v5179_v20  ;;  %2787 = vmatprep.subr.bf16.mxu0 %v5184_v22  ;;  %v2917_v20 = vld [vmem:[#allocation3 + $0x8] sm:$0xfc] }
 0x1b0   : > { %2873 = vmatprep.subr.bf16.mxu1 %v5187_v23  ;;  %v5248_v22 = vld [vmem:[%s6893_s3 + $0x7e0] ss:$16 sps:$4 sm:$0xff]   ;;  %v2929_v23 = vpack.c.bf16 %v2921_v15, %v2921_v15  ;;  %v5319_v15 = vld [vmem:[%s6893_s3 + $0x94c] ss:$16 sps:$4 sm:$0xff]  }
 0x1b2   : > { %2788 = vmatpush1.bf16.msra.mxu0 %v5182_v24  ;;  %v5251_v24 = vld [vmem:[%s6893_s3 + $0x7e8] ss:$16 sps:$4 sm:$0xff]  }
 0x1b3   : > { %2874 = vmatpush1.bf16.msra.mxu1 %v5185_v25  ;;  %2789 = vmatprep.subr.bf16.mxu0 %v5190_v28  ;;  %v5256_v25 = vld [vmem:[%s6893_s3 + $0x804] ss:$16 sps:$4 sm:$0xff]   ;;  %v2074_v28 = vor.u32 %v2073_v18, %v2069_v35  ;;  %v5317_v35 = vld [vmem:[%s6893_s3 + $0x948] ss:$16 sps:$4 sm:$0xff]  }
 0x1b4   : > { %2875 = vmatprep.subr.bf16.mxu1 %v5193_v29  ;;  %v2078_v29 = vrot.slane %v2076_v19, 1  ;;  %v5322_v18 = vld [vmem:[%s6893_s3 + $0x964] ss:$16 sps:$4 sm:$0xff]   ;;  %v5325_v19 = vld [vmem:[%s6893_s3 + $0x96c] ss:$16 sps:$4 sm:$0xff]  }
 0x1b6   : > { %2790 = vmatpush1.bf16.msra.mxu0 %v5188_v30  ;;  %v5259_v30 = vld [vmem:[%s6893_s3 + $0x80c] ss:$16 sps:$4 sm:$0xff]  }
 0x1b7   : > { %2876 = vmatpush1.bf16.msra.mxu1 %v5191_v31  ;;  %2791 = vmatprep.subr.bf16.mxu0 %v5196_v32  ;;  %v2925_v31 = vpack.c.bf16 %v5881_v27, %v2917_v20  ;;  %v5254_v32 = vld [vmem:[%s6893_s3 + $0x800] ss:$16 sps:$4 sm:$0xff]   ;;  %v5262_v27 = vld [vmem:[%s6893_s3 + $0x824] ss:$16 sps:$4 sm:$0xff]  }
 0x1b8   : > { %2877 = vmatprep.subr.bf16.mxu1 %v5199_v33  ;;  %v3074_v33 = vrot.slane %v2929_v23, 1  ;;  %v5320_v20 = vld [vmem:[%s6893_s3 + $0x960] ss:$16 sps:$4 sm:$0xff]   ;;  %v5328_v23 = vld [vmem:[%s6893_s3 + $0x984] ss:$16 sps:$4 sm:$0xff]  }
 0x1ba   : > { %2792 = vmatpush1.bf16.msra.mxu0 %v5194_v34  ;;  %v5257_v34 = vld [vmem:[%s6893_s3 + $0x808] ss:$16 sps:$4 sm:$0xff]  }
 0x1bb   : > { %2878 = vmatpush1.bf16.msra.mxu1 %v5197_v36  ;;  %2793 = vmatprep.subr.bf16.mxu0 %v5202_v37  ;;  %v2079_v36 = vsel %vm2043_vm3, %v2074_v28, %v2078_v29  ;;  %v3073_v37 = vrot.slane %v2925_v31, 1  ;;  %v5329_v28 = vld [vmem:[%s6893_s3 + $0x988] ss:$16 sps:$4 sm:$0xff]   ;;  %v5334_v29 = vld [vmem:[%s6893_s3 + $0x9a4] ss:$16 sps:$4 sm:$0xff]  }
 0x1bc   : > { %2879 = vmatprep.subr.bf16.mxu1 %v5205_v38  ;;  %v5265_v38 = vld [vmem:[%s6893_s3 + $0x82c] ss:$16 sps:$4 sm:$0xff]   ;;  %v5332_v31 = vld [vmem:[%s6893_s3 + $0x9a0] ss:$16 sps:$4 sm:$0xff]  }
 0x1be   : > { %2794 = vmatpush1.bf16.msra.mxu0 %v5200_v39  ;;  %v3075_v39 = vsel %vm3069_vm4, %v3073_v37, %v3074_v33  ;;  %v5340_v33 = vld [vmem:[%s6893_s3 + $0x9c4] ss:$16 sps:$4 sm:$0xff]   ;;  %v5338_v37 = vld [vmem:[%s6893_s3 + $0x9c0] ss:$16 sps:$4 sm:$0xff]  }
 0x1bf   : > { %2880 = vmatpush1.bf16.msra.mxu1 %v5203_v40  ;;  %2795 = vmatprep.subr.bf16.mxu0 %v5208_v42  ;;  %v5260_v40 = vld [vmem:[%s6893_s3 + $0x820] ss:$16 sps:$4 sm:$0xff]   ;;  %v5263_v42 = vld [vmem:[%s6893_s3 + $0x828] ss:$16 sps:$4 sm:$0xff]  }
 0x1c0   : > { %2881 = vmatprep.subr.bf16.mxu1 %v5211_v43  ;;  %v5268_v43 = vld [vmem:[%s6893_s3 + $0x844] ss:$16 sps:$4 sm:$0xff]  }
 0x1c2   : > { %2796 = vmatpush1.bf16.msra.mxu0 %v5206_v45  ;;  %v5271_v45 = vld [vmem:[%s6893_s3 + $0x84c] ss:$16 sps:$4 sm:$0xff]  }
 0x1c3   : > { %2882 = vmatpush1.bf16.msra.mxu1 %v5209_v46  ;;  %2797 = vmatprep.subr.bf16.mxu0 %v5214_v47  ;;  %v5266_v46 = vld [vmem:[%s6893_s3 + $0x840] ss:$16 sps:$4 sm:$0xff]   ;;  %v5269_v47 = vld [vmem:[%s6893_s3 + $0x848] ss:$16 sps:$4 sm:$0xff]  }
 0x1c4   : > { %2883 = vmatprep.subr.bf16.mxu1 %v5217_v48  ;;  %v5274_v48 = vld [vmem:[%s6893_s3 + $0x864] ss:$16 sps:$4 sm:$0xff]  }
 0x1c6   : > { %2798 = vmatpush1.bf16.msra.mxu0 %v5212_v49  ;;  %v5277_v49 = vld [vmem:[%s6893_s3 + $0x86c] ss:$16 sps:$4 sm:$0xff]  }
 0x1c7   : > { %2884 = vmatpush1.bf16.msra.mxu1 %v5215_v52  ;;  %2799 = vmatprep.subr.bf16.mxu0 %v5220_v26  ;;  %v5272_v52 = vld [vmem:[%s6893_s3 + $0x860] ss:$16 sps:$4 sm:$0xff]   ;;  %v5275_v26 = vld [vmem:[%s6893_s3 + $0x868] ss:$16 sps:$4 sm:$0xff]  }
 0x1c8   : > { %2885 = vmatprep.subr.bf16.mxu1 %v5223_v50  ;;  %v5280_v50 = vld [vmem:[%s6893_s3 + $0x884] ss:$16 sps:$4 sm:$0xff]  }
 0x1ca   : > { %2800 = vmatpush1.bf16.msra.mxu0 %v5218_v51  ;;  %v5283_v51 = vld [vmem:[%s6893_s3 + $0x88c] ss:$16 sps:$4 sm:$0xff]  }
 0x1cb   : > { %2886 = vmatpush1.bf16.msra.mxu1 %v5221_v53  ;;  %2801 = vmatprep.subr.bf16.mxu0 %v5226_v54  ;;  %v5278_v53 = vld [vmem:[%s6893_s3 + $0x880] ss:$16 sps:$4 sm:$0xff]   ;;  %v5281_v54 = vld [vmem:[%s6893_s3 + $0x888] ss:$16 sps:$4 sm:$0xff]  }
 0x1cc   : > { %2887 = vmatprep.subr.bf16.mxu1 %v5229_v55  ;;  %v5286_v55 = vld [vmem:[%s6893_s3 + $0x8a4] ss:$16 sps:$4 sm:$0xff]  }
 0x1ce   : > { %2802 = vmatpush1.bf16.msra.mxu0 %v5224_v56  ;;  %v5289_v56 = vld [vmem:[%s6893_s3 + $0x8ac] ss:$16 sps:$4 sm:$0xff]  }
 0x1cf   : > { %2888 = vmatpush1.bf16.msra.mxu1 %v5227_v57  ;;  %2803 = vmatprep.subr.bf16.mxu0 %v5232_v58  ;;  %v5284_v57 = vld [vmem:[%s6893_s3 + $0x8a0] ss:$16 sps:$4 sm:$0xff]   ;;  %v5287_v58 = vld [vmem:[%s6893_s3 + $0x8a8] ss:$16 sps:$4 sm:$0xff]  }
 0x1d0   : > { %2889 = vmatprep.subr.bf16.mxu1 %v5235_v59  ;;  %v5292_v59 = vld [vmem:[%s6893_s3 + $0x8c4] ss:$16 sps:$4 sm:$0xff]  }
 0x1d2   : > { %2804 = vmatpush1.bf16.msra.mxu0 %v5230_v61  ;;  %v5290_v61 = vld [vmem:[%s6893_s3 + $0x8c0] ss:$16 sps:$4 sm:$0xff]  }
 0x1d3   : > { %2890 = vmatpush1.bf16.msra.mxu1 %v5233_v62  ;;  %2805 = vmatprep.subr.bf16.mxu0 %v5238_v63  ;;  %v5293_v62 = vld [vmem:[%s6893_s3 + $0x8c8] ss:$16 sps:$4 sm:$0xff]   ;;  %v5298_v63 = vld [vmem:[%s6893_s3 + $0x8e4] ss:$16 sps:$4 sm:$0xff]  }
 0x1d4   : > { %2891 = vmatprep.subr.bf16.mxu1 %v5241_v2  ;;  %v5301_v2 = vld [vmem:[%s6893_s3 + $0x8ec] ss:$16 sps:$4 sm:$0xff]  }
 0x1d6   : > { %2806 = vmatpush1.bf16.msra.mxu0 %v5236_v6  ;;  %v5304_v6 = vld [vmem:[%s6893_s3 + $0x904] ss:$16 sps:$4 sm:$0xff]  }
 0x1d7   : > { %2892 = vmatpush1.bf16.msra.mxu1 %v5239_v7  ;;  %2807 = vmatprep.subr.bf16.mxu0 %v5244_v8  ;;  %v5307_v7 = vld [vmem:[%s6893_s3 + $0x90c] ss:$16 sps:$4 sm:$0xff]   ;;  %v5302_v8 = vld [vmem:[%s6893_s3 + $0x900] ss:$16 sps:$4 sm:$0xff]  }
 0x1d8   : > { %2893 = vmatprep.subr.bf16.mxu1 %v5247_v21  ;;  %v5305_v21 = vld [vmem:[%s6893_s3 + $0x908] ss:$16 sps:$4 sm:$0xff]  }
 0x1da   : > { %2808 = vmatpush1.bf16.msra.mxu0 %v5242_v11  ;;  %v5308_v11 = vld [vmem:[%s6893_s3 + $0x920] ss:$16 sps:$4 sm:$0xff]  }
 0x1db   : > { %2894 = vmatpush1.bf16.msra.mxu1 %v5245_v12  ;;  %2809 = vmatprep.subr.bf16.mxu0 %v5250_v13  ;;  %v5311_v12 = vld [vmem:[%s6893_s3 + $0x928] ss:$16 sps:$4 sm:$0xff]   ;;  %v5316_v13 = vld [vmem:[%s6893_s3 + $0x944] ss:$16 sps:$4 sm:$0xff]  }
 0x1dc   : > { %2895 = vmatprep.subr.bf16.mxu1 %v5253_v16  ;;  %v5314_v16 = vld [vmem:[%s6893_s3 + $0x940] ss:$16 sps:$4 sm:$0xff]  }
 0x1de   : > { %2810 = vmatpush1.bf16.msra.mxu0 %v5248_v22  ;;  %v5323_v22 = vld [vmem:[%s6893_s3 + $0x968] ss:$16 sps:$4 sm:$0xff]  }
 0x1df   : > { %2896 = vmatpush1.bf16.msra.mxu1 %v5251_v24  ;;  %3726 = vmatprep.subr.bf16.mxu0 %v5256_v25  ;;  %v5331_v24 = vld [vmem:[%s6893_s3 + $0x98c] ss:$16 sps:$4 sm:$0xff]   ;;  %v5326_v25 = vld [vmem:[%s6893_s3 + $0x980] ss:$16 sps:$4 sm:$0xff]  }
 0x1e0   : > { %3812 = vmatprep.subr.bf16.mxu1 %v5259_v30  ;;  %v5337_v30 = vld [vmem:[%s6893_s3 + $0x9ac] ss:$16 sps:$4 sm:$0xff]  }
 0x1e1   : > { %2812 = vmatmul.mubr.bf16.vlgmr.msra.gmra.mrb[4].mxu0 %v2079_v36 }
 0x1e2   : > { %2898 = vmatmul.mubr.bf16.vlgmr.msra.gmra.mrb[4].mxu1 %v2079_v36  ;;  %3727 = vmatpush1.bf16.msra.mxu0 %v5254_v32  ;;  %v5335_v32 = vld [vmem:[%s6893_s3 + $0x9a8] ss:$16 sps:$4 sm:$0xff]  }
 0x1e3   : > { %3758 = vmatprep.mubr.bf16.mxu0 %v3075_v39  ;;  %3813 = vmatpush1.bf16.msra.mxu1 %v5257_v34  ;;  %v5343_v34 = vld [vmem:[%s6893_s3 + $0x9cc] ss:$16 sps:$4 sm:$0xff]   ;;  %v2920_v36 = vld [vmem:[#allocation3 + $0x40] sm:$0x3] }
 0x1e4   : > { %3844 = vmatprep.mubr.bf16.mxu1 %v3075_v39  ;;  %3728 = vmatprep.subr.bf16.mxu0 %v5262_v27  ;;  %v5341_v27 = vld [vmem:[%s6893_s3 + $0x9c8] ss:$16 sps:$4 sm:$0xff]  }
 0x1e5   : > { %3814 = vmatprep.subr.bf16.mxu1 %v5265_v38  ;;  %v5346_v38 = vld [vmem:[%s6893_s3 + $0x9e4] ss:$16 sps:$4 sm:$0xff]   ;;  %v2916_v39 = vld [vmem:[#allocation3] sm:$0xfc] }
 0x1e6   : > { %3729 = vmatpush1.bf16.msra.mxu0 %v5260_v40  ;;  %v5349_v40 = vld [vmem:[%s6893_s3 + $0x9ec] ss:$16 sps:$4 sm:$0xff]  }
 0x1e7   : > { %3815 = vmatpush1.bf16.msra.mxu1 %v5263_v42  ;;  %3730 = vmatprep.subr.bf16.mxu0 %v5268_v43  ;;  %v2928_v42 = vpack.c.bf16 %v2920_v36, %v2920_v36  ;;  %v5344_v43 = vld [vmem:[%s6893_s3 + $0x9e0] ss:$16 sps:$4 sm:$0xff]   ;;  %v5418_v36 = vld [vmem:[%s6893_s3 + $0xb64] ss:$16 sps:$4 sm:$0xff]  }
 0x1e8   : > { %3816 = vmatprep.subr.bf16.mxu1 %v5271_v45  ;;  %v5446_v45 = vld [vmem:[#allocation3 + $0x20] sm:$0xff] }
 0x1ea   : > { %3731 = vmatpush1.bf16.msra.mxu0 %v5266_v46  ;;  %v2924_v46 = vpack.c.bf16 %v5446_v45, %v2916_v39  ;;  %v5424_v39 = vld [vmem:[%s6893_s3 + $0xb84] ss:$16 sps:$4 sm:$0xff]  }
 0x1eb   : > { %3817 = vmatpush1.bf16.msra.mxu1 %v5269_v47  ;;  %3732 = vmatprep.subr.bf16.mxu0 %v5274_v48  ;;  %v5347_v47 = vld [vmem:[%s6893_s3 + $0x9e8] ss:$16 sps:$4 sm:$0xff]   ;;  %v5352_v48 = vld [vmem:[%s6893_s3 + $0xa04] ss:$16 sps:$4 sm:$0xff]  }
 0x1ec   : > { %3818 = vmatprep.subr.bf16.mxu1 %v5277_v49  ;;  %v3071_v49 = vrot.slane %v2928_v42, 1  ;;  %v5422_v42 = vld [vmem:[%s6893_s3 + $0xb80] ss:$16 sps:$4 sm:$0xff]   ;;  %v5430_v45 = vld [vmem:[%s6893_s3 + $0xba4] ss:$16 sps:$4 sm:$0xff]  }
 0x1ee   : > { %3733 = vmatpush1.bf16.msra.mxu0 %v5272_v52  ;;  %v5355_v52 = vld [vmem:[%s6893_s3 + $0xa0c] ss:$16 sps:$4 sm:$0xff]  }
 0x1ef   : > { %3819 = vmatpush1.bf16.msra.mxu1 %v5275_v26  ;;  %3734 = vmatprep.subr.bf16.mxu0 %v5280_v50  ;;  %v3070_v26 = vrot.slane %v2924_v46, 1  ;;  %v5350_v50 = vld [vmem:[%s6893_s3 + $0xa00] ss:$16 sps:$4 sm:$0xff]   ;;  %v5433_v46 = vld [vmem:[%s6893_s3 + $0xbac] ss:$16 sps:$4 sm:$0xff]  }
 0x1f0   : > { %3820 = vmatprep.subr.bf16.mxu1 %v5283_v51  ;;  %v5353_v51 = vld [vmem:[%s6893_s3 + $0xa08] ss:$16 sps:$4 sm:$0xff]  }
 0x1f2   : > { %3735 = vmatpush1.bf16.msra.mxu0 %v5278_v53  ;;  %v3072_v53 = vsel %vm3069_vm4, %v3070_v26, %v3071_v49  ;;  %v5436_v49 = vld [vmem:[%s6893_s3 + $0xbc4] ss:$16 sps:$4 sm:$0xff]   ;;  %v5434_v26 = vld [vmem:[%s6893_s3 + $0xbc0] ss:$16 sps:$4 sm:$0xff]  }
 0x1f3   : > { %3821 = vmatpush1.bf16.msra.mxu1 %v5281_v54  ;;  %3736 = vmatprep.subr.bf16.mxu0 %v5286_v55  ;;  %v5358_v54 = vld [vmem:[%s6893_s3 + $0xa24] ss:$16 sps:$4 sm:$0xff]   ;;  %v5361_v55 = vld [vmem:[%s6893_s3 + $0xa2c] ss:$16 sps:$4 sm:$0xff]  }
 0x1f4   : > { %3822 = vmatprep.subr.bf16.mxu1 %v5289_v56  ;;  %v5356_v56 = vld [vmem:[%s6893_s3 + $0xa20] ss:$16 sps:$4 sm:$0xff]  }
 0x1f6   : > { %3737 = vmatpush1.bf16.msra.mxu0 %v5284_v57  ;;  %v5359_v57 = vld [vmem:[%s6893_s3 + $0xa28] ss:$16 sps:$4 sm:$0xff]  }
 0x1f7   : > { %3823 = vmatpush1.bf16.msra.mxu1 %v5287_v58  ;;  %3738 = vmatprep.subr.bf16.mxu0 %v5292_v59  ;;  %v5364_v58 = vld [vmem:[%s6893_s3 + $0xa44] ss:$16 sps:$4 sm:$0xff]   ;;  %v5367_v59 = vld [vmem:[%s6893_s3 + $0xa4c] ss:$16 sps:$4 sm:$0xff]  }
 0x1f8   : > { %3824 = vmatprep.subr.bf16.mxu1 %v5295_v60  ;;  %v5362_v60 = vld [vmem:[%s6893_s3 + $0xa40] ss:$16 sps:$4 sm:$0xff]  }
 0x1fa   : > { %3739 = vmatpush1.bf16.msra.mxu0 %v5290_v61  ;;  %v5365_v61 = vld [vmem:[%s6893_s3 + $0xa48] ss:$16 sps:$4 sm:$0xff]  }
 0x1fb   : > { %3825 = vmatpush1.bf16.msra.mxu1 %v5293_v62  ;;  %3740 = vmatprep.subr.bf16.mxu0 %v5298_v63  ;;  %v5373_v62 = vld [vmem:[%s6893_s3 + $0xa6c] ss:$16 sps:$4 sm:$0xff]   ;;  %v5368_v63 = vld [vmem:[%s6893_s3 + $0xa60] ss:$16 sps:$4 sm:$0xff]  }
 0x1fc   : > { %3826 = vmatprep.subr.bf16.mxu1 %v5301_v2  ;;  %v5371_v2 = vld [vmem:[%s6893_s3 + $0xa68] ss:$16 sps:$4 sm:$0xff]  }
 0x1fe   : > { %3741 = vmatpush1.bf16.msra.mxu0 %v5296_v4  ;;  %v5376_v4 = vld [vmem:[%s6893_s3 + $0xa84] ss:$16 sps:$4 sm:$0xff]  }
 0x1ff   : > { %3827 = vmatpush1.bf16.msra.mxu1 %v5299_v5  ;;  %3742 = vmatprep.subr.bf16.mxu0 %v5304_v6  ;;  %v5379_v5 = vld [vmem:[%s6893_s3 + $0xa8c] ss:$16 sps:$4 sm:$0xff]   ;;  %v5374_v6 = vld [vmem:[%s6893_s3 + $0xa80] ss:$16 sps:$4 sm:$0xff]  }
 0x200   : > { %3828 = vmatprep.subr.bf16.mxu1 %v5307_v7  ;;  %v5377_v7 = vld [vmem:[%s6893_s3 + $0xa88] ss:$16 sps:$4 sm:$0xff]  }
 0x202   : > { %3743 = vmatpush1.bf16.msra.mxu0 %v5302_v8  ;;  %v5382_v8 = vld [vmem:[%s6893_s3 + $0xaa4] ss:$16 sps:$4 sm:$0xff]  }
 0x203   : > { %3829 = vmatpush1.bf16.msra.mxu1 %v5305_v21  ;;  %3744 = vmatprep.subr.bf16.mxu0 %v5310_v9  ;;  %v5385_v21 = vld [vmem:[%s6893_s3 + $0xaac] ss:$16 sps:$4 sm:$0xff]   ;;  %v5380_v9 = vld [vmem:[%s6893_s3 + $0xaa0] ss:$16 sps:$4 sm:$0xff]  }
 0x204   : > { %3830 = vmatprep.subr.bf16.mxu1 %v5313_v10  ;;  %v5383_v10 = vld [vmem:[%s6893_s3 + $0xaa8] ss:$16 sps:$4 sm:$0xff]  }
 0x206   : > { %3745 = vmatpush1.bf16.msra.mxu0 %v5308_v11  ;;  %v5388_v11 = vld [vmem:[%s6893_s3 + $0xac4] ss:$16 sps:$4 sm:$0xff]  }
 0x207   : > { %3831 = vmatpush1.bf16.msra.mxu1 %v5311_v12  ;;  %3746 = vmatprep.subr.bf16.mxu0 %v5316_v13  ;;  %v5391_v12 = vld [vmem:[%s6893_s3 + $0xacc] ss:$16 sps:$4 sm:$0xff]   ;;  %v5386_v13 = vld [vmem:[%s6893_s3 + $0xac0] ss:$16 sps:$4 sm:$0xff]  }
 0x208   : > { %3832 = vmatprep.subr.bf16.mxu1 %v5319_v15  ;;  %v5389_v15 = vld [vmem:[%s6893_s3 + $0xac8] ss:$16 sps:$4 sm:$0xff]  }
 0x20a   : > { %3747 = vmatpush1.bf16.msra.mxu0 %v5314_v16  ;;  %v5394_v16 = vld [vmem:[%s6893_s3 + $0xae4] ss:$16 sps:$4 sm:$0xff]  }
 0x20b   : > { %3833 = vmatpush1.bf16.msra.mxu1 %v5317_v35  ;;  %3748 = vmatprep.subr.bf16.mxu0 %v5322_v18  ;;  %v5397_v35 = vld [vmem:[%s6893_s3 + $0xaec] ss:$16 sps:$4 sm:$0xff]   ;;  %v5392_v18 = vld [vmem:[%s6893_s3 + $0xae0] ss:$16 sps:$4 sm:$0xff]  }
 0x20c   : > { %3834 = vmatprep.subr.bf16.mxu1 %v5325_v19  ;;  %v5395_v19 = vld [vmem:[%s6893_s3 + $0xae8] ss:$16 sps:$4 sm:$0xff]  }
 0x20e   : > { %3749 = vmatpush1.bf16.msra.mxu0 %v5320_v20  ;;  %v5400_v20 = vld [vmem:[%s6893_s3 + $0xb04] ss:$16 sps:$4 sm:$0xff]  }
 0x20f   : > { %3835 = vmatpush1.bf16.msra.mxu1 %v5323_v22  ;;  %3750 = vmatprep.subr.bf16.mxu0 %v5328_v23  ;;  %v5403_v22 = vld [vmem:[%s6893_s3 + $0xb0c] ss:$16 sps:$4 sm:$0xff]   ;;  %v5398_v23 = vld [vmem:[%s6893_s3 + $0xb00] ss:$16 sps:$4 sm:$0xff]  }
 0x210   : > { %3836 = vmatprep.subr.bf16.mxu1 %v5331_v24  ;;  %v5401_v24 = vld [vmem:[%s6893_s3 + $0xb08] ss:$16 sps:$4 sm:$0xff]  }
 0x212   : > { %3751 = vmatpush1.bf16.msra.mxu0 %v5326_v25  ;;  %v5406_v25 = vld [vmem:[%s6893_s3 + $0xb24] ss:$16 sps:$4 sm:$0xff]  }
 0x213   : > { %3837 = vmatpush1.bf16.msra.mxu1 %v5329_v28  ;;  %3752 = vmatprep.subr.bf16.mxu0 %v5334_v29  ;;  %v5409_v28 = vld [vmem:[%s6893_s3 + $0xb2c] ss:$16 sps:$4 sm:$0xff]   ;;  %v5404_v29 = vld [vmem:[%s6893_s3 + $0xb20] ss:$16 sps:$4 sm:$0xff]  }
 0x214   : > { %3838 = vmatprep.subr.bf16.mxu1 %v5337_v30  ;;  %v5407_v30 = vld [vmem:[%s6893_s3 + $0xb28] ss:$16 sps:$4 sm:$0xff]  }
 0x216   : > { %3753 = vmatpush1.bf16.msra.mxu0 %v5332_v31  ;;  %v5412_v31 = vld [vmem:[%s6893_s3 + $0xb44] ss:$16 sps:$4 sm:$0xff]  }
 0x217   : > { %3839 = vmatpush1.bf16.msra.mxu1 %v5335_v32  ;;  %3754 = vmatprep.subr.bf16.mxu0 %v5340_v33  ;;  %v5415_v32 = vld [vmem:[%s6893_s3 + $0xb4c] ss:$16 sps:$4 sm:$0xff]   ;;  %v5410_v33 = vld [vmem:[%s6893_s3 + $0xb40] ss:$16 sps:$4 sm:$0xff]  }
 0x218   : > { %3840 = vmatprep.subr.bf16.mxu1 %v5343_v34  ;;  %v5413_v34 = vld [vmem:[%s6893_s3 + $0xb48] ss:$16 sps:$4 sm:$0xff]  }
 0x21a   : > { %3755 = vmatpush1.bf16.msra.mxu0 %v5338_v37  ;;  %v5421_v37 = vld [vmem:[%s6893_s3 + $0xb6c] ss:$16 sps:$4 sm:$0xff]  }
 0x21b   : > { %3841 = vmatpush1.bf16.msra.mxu1 %v5341_v27  ;;  %3756 = vmatprep.subr.bf16.mxu0 %v5346_v38  ;;  %v5416_v27 = vld [vmem:[%s6893_s3 + $0xb60] ss:$16 sps:$4 sm:$0xff]   ;;  %v5419_v38 = vld [vmem:[%s6893_s3 + $0xb68] ss:$16 sps:$4 sm:$0xff]  }
 0x21c   : > { %3842 = vmatprep.subr.bf16.mxu1 %v5349_v40  ;;  %v5427_v40 = vld [vmem:[%s6893_s3 + $0xb8c] ss:$16 sps:$4 sm:$0xff]  }
 0x21e   : > { %3757 = vmatpush1.bf16.msra.mxu0 %v5344_v43  ;;  %v5425_v43 = vld [vmem:[%s6893_s3 + $0xb88] ss:$16 sps:$4 sm:$0xff]  }
 0x21f   : > { %3843 = vmatpush1.bf16.msra.mxu1 %v5347_v47  ;;  %3769 = vmatprep.subr.bf16.mxu0 %v5352_v48  ;;  %v5428_v47 = vld [vmem:[%s6893_s3 + $0xba0] ss:$16 sps:$4 sm:$0xff]   ;;  %v5431_v48 = vld [vmem:[%s6893_s3 + $0xba8] ss:$16 sps:$4 sm:$0xff]  }
 0x220   : > { %3855 = vmatprep.subr.bf16.mxu1 %v5355_v52  ;;  %v5439_v52 = vld [vmem:[%s6893_s3 + $0xbcc] ss:$16 sps:$4 sm:$0xff]  }
 0x221   : > { %3759 = vmatmul.mubr.bf16.vlgmr.msra.gmra.mrb[4].mxu0 %v3072_v53 }
 0x222   : > { %3845 = vmatmul.mubr.bf16.vlgmr.msra.gmra.mrb[4].mxu1 %v3072_v53  ;;  %3770 = vmatpush1.bf16.msra.mxu0 %v5350_v50  ;;  %v5437_v50 = vld [vmem:[%s6893_s3 + $0xbc8] ss:$16 sps:$4 sm:$0xff]   ;;  %v5445_v53 = vld [vmem:[%s6893_s3 + $0xbec] ss:$16 sps:$4 sm:$0xff]  }
 0x223   : > { %3801 = vmatprep.mubr.bf16.mxu0 %v5963_v41  ;;  %3856 = vmatpush1.bf16.msra.mxu1 %v5353_v51  ;;  %v5442_v51 = vld [vmem:[%s6893_s3 + $0xbe4] ss:$16 sps:$4 sm:$0xff]  }
 0x224   : > { %3887 = vmatprep.mubr.bf16.mxu1 %v5963_v41  ;;  %3771 = vmatprep.subr.bf16.mxu0 %v5358_v54  ;;  %v5370_v41 = vld [vmem:[%s6893_s3 + $0xa64] ss:$16 sps:$4 sm:$0xff]   ;;  %v5440_v54 = vld [vmem:[%s6893_s3 + $0xbe0] ss:$16 sps:$4 sm:$0xff]  }
 0x225   : > { %3857 = vmatprep.subr.bf16.mxu1 %v5361_v55  ;;  %v5443_v55 = vld [vmem:[%s6893_s3 + $0xbe8] ss:$16 sps:$4 sm:$0xff]  }
 0x226   : > { %3772 = vmatpush1.bf16.msra.mxu0 %v5356_v56  ;;  %v912_v56 = vld [vmem:[%s6894_s4] sm:$0xf] }
 0x227   : > { %3858 = vmatpush1.bf16.msra.mxu1 %v5359_v57  ;;  %3773 = vmatprep.subr.bf16.mxu0 %v5364_v58  ;;  %v917_v57 = vrot.slane %v912_v56, %v251_v1  ;;  %v925_v58 = vrot.slane %v912_v56, %v259_v14 }
 0x228   : > { %3859 = vmatprep.subr.bf16.mxu1 %v5367_v59  ;;  %v921_v59 = vrot.slane %v912_v56, %v255_v3 }
 0x22a   : > { %3774 = vmatpush1.bf16.msra.mxu0 %v5362_v60  ;;  %v929_v60 = vrot.slane %v912_v56, %v263_v17 }
 0x22b   : > { %3860 = vmatpush1.bf16.msra.mxu1 %v5365_v61  ;;  %3775 = vmatprep.subr.bf16.mxu0 %v5370_v41 }
 0x22c   : > { %3861 = vmatprep.subr.bf16.mxu1 %v5373_v62 }
 0x22e   : > { %3776 = vmatpush1.bf16.msra.mxu0 %v5368_v63 }
 0x22f   : > { %3862 = vmatpush1.bf16.msra.mxu1 %v5371_v2  ;;  %3777 = vmatprep.subr.bf16.mxu0 %v5376_v4 }
 0x230   : > { %3863 = vmatprep.subr.bf16.mxu1 %v5379_v5 }
 0x232   : > { %3778 = vmatpush1.bf16.msra.mxu0 %v5374_v6 }
 0x233   : > { %3864 = vmatpush1.bf16.msra.mxu1 %v5377_v7  ;;  %3779 = vmatprep.subr.bf16.mxu0 %v5382_v8 }
 0x234   : > { %3865 = vmatprep.subr.bf16.mxu1 %v5385_v21 }
 0x236   : > { %3780 = vmatpush1.bf16.msra.mxu0 %v5380_v9 }
 0x237   : > { %3866 = vmatpush1.bf16.msra.mxu1 %v5383_v10  ;;  %3781 = vmatprep.subr.bf16.mxu0 %v5388_v11 }
 0x238   : > { %3867 = vmatprep.subr.bf16.mxu1 %v5391_v12 }
 0x23a   : > { %3782 = vmatpush1.bf16.msra.mxu0 %v5386_v13 }
 0x23b   : > { %3868 = vmatpush1.bf16.msra.mxu1 %v5389_v15  ;;  %3783 = vmatprep.subr.bf16.mxu0 %v5394_v16 }
 0x23c   : > { %3869 = vmatprep.subr.bf16.mxu1 %v5397_v35 }
 0x23e   : > { %3784 = vmatpush1.bf16.msra.mxu0 %v5392_v18 }
 0x23f   : > { %3870 = vmatpush1.bf16.msra.mxu1 %v5395_v19  ;;  %3785 = vmatprep.subr.bf16.mxu0 %v5400_v20 }
 0x240   : > { %3871 = vmatprep.subr.bf16.mxu1 %v5403_v22 }
 0x242   : > { %3786 = vmatpush1.bf16.msra.mxu0 %v5398_v23 }
 0x243   : > { %3872 = vmatpush1.bf16.msra.mxu1 %v5401_v24  ;;  %3787 = vmatprep.subr.bf16.mxu0 %v5406_v25 }
 0x244   : > { %3873 = vmatprep.subr.bf16.mxu1 %v5409_v28 }
 0x246   : > { %3788 = vmatpush1.bf16.msra.mxu0 %v5404_v29 }
 0x247   : > { %3874 = vmatpush1.bf16.msra.mxu1 %v5407_v30  ;;  %3789 = vmatprep.subr.bf16.mxu0 %v5412_v31 }
 0x248   : > { %3875 = vmatprep.subr.bf16.mxu1 %v5415_v32 }
 0x24a   : > { %3790 = vmatpush1.bf16.msra.mxu0 %v5410_v33 }
 0x24b   : > { %3876 = vmatpush1.bf16.msra.mxu1 %v5413_v34  ;;  %3791 = vmatprep.subr.bf16.mxu0 %v5418_v36 }
 0x24c   : > { %3877 = vmatprep.subr.bf16.mxu1 %v5421_v37 }
 0x24e   : > { %3792 = vmatpush1.bf16.msra.mxu0 %v5416_v27 }
 0x24f   : > { %3878 = vmatpush1.bf16.msra.mxu1 %v5419_v38  ;;  %3793 = vmatprep.subr.bf16.mxu0 %v5424_v39 }
 0x250   : > { %3879 = vmatprep.subr.bf16.mxu1 %v5427_v40 }
 0x252   : > { %3794 = vmatpush1.bf16.msra.mxu0 %v5422_v42 }
 0x253   : > { %3880 = vmatpush1.bf16.msra.mxu1 %v5425_v43  ;;  %3795 = vmatprep.subr.bf16.mxu0 %v5430_v45 }
 0x254   : > { %3881 = vmatprep.subr.bf16.mxu1 %v5433_v46 }
 0x256   : > { %3796 = vmatpush1.bf16.msra.mxu0 %v5428_v47 }
 0x257   : > { %3882 = vmatpush1.bf16.msra.mxu1 %v5431_v48  ;;  %3797 = vmatprep.subr.bf16.mxu0 %v5436_v49 }
 0x258   : > { %3883 = vmatprep.subr.bf16.mxu1 %v5439_v52 }
 0x25a   : > { %3798 = vmatpush1.bf16.msra.mxu0 %v5434_v26 }
 0x25b   : > { %3884 = vmatpush1.bf16.msra.mxu1 %v5437_v50  ;;  %3799 = vmatprep.subr.bf16.mxu0 %v5442_v51 }
 0x25c   : > { %3885 = vmatprep.subr.bf16.mxu1 %v5445_v53 }
 0x25e   : > { %3800 = vmatpush1.bf16.msra.mxu0 %v5440_v54 }
 0x25f   : > { %3886 = vmatpush1.bf16.msra.mxu1 %v5443_v55 }
 0x261   : > { %3802 = vmatmul.mubr.bf16.vlgmr.msra.gmra.mrb[4].mxu0 %v5972_v44 }
 0x262   : > { %3888 = vmatmul.mubr.bf16.vlgmr.msra.gmra.mrb[4].mxu1 %v5972_v44 }
 0x334   : > { %v3803_v61 = vpop.f32.mrb[4].mxu0 }
 0x335   : > { %v4724_v41 = vadd.f32 %v3803_v61, %v917_v57  ;;  %v3889_v44 = vpop.f32.mrb[4].mxu1  ;;  %v3805_v62 = vpop.f32.mrb[5].mxu0 }
 0x336   : > { %v4728_v63 = vadd.f32 %v3889_v44, %v925_v58  ;;  %v4725_v1 = vadd.f32 %v3805_v62, %v921_v59  ;;  %v3891_v2 = vpop.f32.mrb[5].mxu1  ;;  %v3807_v4 = vpop.f32.mrb[6].mxu0 }
 0x337   : > { %v3906_v14 = vmax.f32 %v4724_v41, 0.0  ;;  %v4729_v5 = vadd.f32 %v3891_v2, %v929_v60  ;;  %v4726_v6 = vadd.f32 %v3807_v4, %v917_v57  ;;  %v3893_v3 = vpop.f32.mrb[6].mxu1  ;;  %v3809_v7 = vpop.f32.mrb[7].mxu0 }
 0x338   : > { %v3908_v8 = vmax.f32 %v4728_v63, 0.0  ;;  %v3907_v0 = vmax.f32 %v4725_v1, 0.0  ;;  %v4730_v17 = vadd.f32 %v3893_v3, %v925_v58  ;;  %v4727_v21 = vadd.f32 %v3809_v7, %v921_v59  ;;  %v3895_v9 = vpop.f32.mrb[7].mxu1 }
 0x339   : > { %3914 = vst [vmem:[%s224_s21] sm:$0xff] %v3906_v14  ;;  %v3909_v10 = vmax.f32 %v4729_v5, 0.0  ;;  %v3910_v11 = vmax.f32 %v4726_v6, 0.0  ;;  %v4731_v12 = vadd.f32 %v3895_v9, %v929_v60 }
 0x33a   : > { %3916 = vst [vmem:[%s224_s21 + $0x10] sm:$0xff] %v3908_v8  ;;  %3915 = vst [vmem:[%s224_s21 + $0x8] sm:$0xff] %v3907_v0  ;;  %v3912_v13 = vmax.f32 %v4730_v17, 0.0  ;;  %v3911_v15 = vmax.f32 %v4727_v21, 0.0 }
 0x33b   : > { %3917 = vst [vmem:[%s224_s21 + $0x18] sm:$0xff] %v3909_v10  ;;  %3918 = vst [vmem:[%s224_s21 + $0x20] sm:$0xff] %v3910_v11  ;;  %v3913_v16 = vmax.f32 %v4731_v12, 0.0 }
 0x33c   : > { %3920 = vst [vmem:[%s224_s21 + $0x30] sm:$0xff] %v3912_v13  ;;  %3919 = vst [vmem:[%s224_s21 + $0x28] sm:$0xff] %v3911_v15 }
 0x33d   : > { %3921 = vst [vmem:[%s224_s21 + $0x38] sm:$0xff] %v3913_v16 }
 0x33e PF: > { %s15_s18 = sadd.s32 1, %s5453_s18  }
 0x33f   : > { %p12_p4 = scmp.ge.s32.totalorder %s15_s18, 4  }
 0x341   :  { %14 = sbr.rel (!%p12_p4) target bundleno = 1 (0x1), region = 74 }

</bundles_post_ra>
